<compile_context>
chip_gen: v7x
topology: tpu7x:2x2x1
jax: 0.10.0
libtpu: 0.0.40
codegen_flags: <defaults>
</compile_context>

<pallas_src>
import jax
import jax.numpy as jnp
from jax.experimental import pallas as pl
from jax.experimental.pallas import tpu as pltpu

EMB1 = 150
EMB2 = 200
EMB3 = 150
HIDDEN = 30
HP = 32            # HIDDEN padded to 32 so 4*HP == 128 (one full lane width)
IN_DIM = 12
OUT_DIM = 3


# ---------------------------------------------------------------------------
# Small static helpers (shapes only; run at trace time)
# ---------------------------------------------------------------------------
def _round_up(n, m):
    return ((n + m - 1) // m) * m


def _pick_row_block(n, cap=1024):
    """Largest multiple of 8 dividing n (<= cap); fall back to n itself."""
    best = None
    for d in range(8, min(n, cap) + 1, 8):
        if n % d == 0:
            best = d
    return best if best is not None else n


def _pick_time_chunk(t, cap=64):
    """Largest divisor of t that is <= cap."""
    best = 1
    for d in range(1, min(t, cap) + 1):
        if t % d == 0:
            best = d
    return best


# ---------------------------------------------------------------------------
# Kernel 1: fused 3-layer MLP + LSTM input projection (batched over all rows)
#   gates_x = relu(relu(relu(x W1+b1) W2+b2) W3+b3) @ W_ih_padded + b_gates
# ---------------------------------------------------------------------------
def mlp_gates_kernel(x_ref, w1_ref, b1_ref, w2_ref, b2_ref, w3_ref, b3_ref,
                     wih_ref, bg_ref, gx_ref):
    x = x_ref[...]
    h1 = jnp.maximum(
        jnp.dot(x, w1_ref[...], preferred_element_type=jnp.float32) + b1_ref[...], 0.0)
    h2 = jnp.maximum(
        jnp.dot(h1, w2_ref[...], preferred_element_type=jnp.float32) + b2_ref[...], 0.0)
    h3 = jnp.maximum(
        jnp.dot(h2, w3_ref[...], preferred_element_type=jnp.float32) + b3_ref[...], 0.0)
    gx_ref[...] = (jnp.dot(h3, wih_ref[...], preferred_element_type=jnp.float32)
                   + bg_ref[...])


# ---------------------------------------------------------------------------
# Kernel 2: LSTM recurrence over a chunk of timesteps (in-kernel fori_loop).
# Only the recurrent h @ W_hh and the elementwise gate math are on the serial
# path.  PyTorch gate order: i, f, g, o.  h/c persist in VMEM scratch.
# ---------------------------------------------------------------------------
def lstm_recurrence_kernel(gx_ref, whh_ref, hs_ref, h_scr, c_scr):
    @pl.when(pl.program_id(0) == 0)
    def _():
        h_scr[...] = jnp.zeros_like(h_scr)
        c_scr[...] = jnp.zeros_like(c_scr)

    whh = whh_ref[...]                      # (HP, 4*HP) -- hoisted load
    n_steps = gx_ref.shape[0]               # static chunk length

    def step(t, carry):
        h, c = carry
        gates = gx_ref[t] + jnp.dot(h, whh, preferred_element_type=jnp.float32)
        i_g = jax.nn.sigmoid(gates[:, 0 * HP:1 * HP])
        f_g = jax.nn.sigmoid(gates[:, 1 * HP:2 * HP])
        g_g = jnp.tanh(gates[:, 2 * HP:3 * HP])
        o_g = jax.nn.sigmoid(gates[:, 3 * HP:4 * HP])
        c_n = f_g * c + i_g * g_g
        h_n = o_g * jnp.tanh(c_n)
        hs_ref[t] = h_n
        return (h_n, c_n)

    h_fin, c_fin = jax.lax.fori_loop(
        0, n_steps, step, (h_scr[...], c_scr[...]), unroll=True)
    h_scr[...] = h_fin
    c_scr[...] = c_fin


# ---------------------------------------------------------------------------
# Kernel 3: single bulk hidden2pos projection for all timesteps
# ---------------------------------------------------------------------------
def pos_projection_kernel(h_ref, w_ref, b_ref, o_ref):
    o_ref[...] = (jnp.dot(h_ref[...], w_ref[...],
                          preferred_element_type=jnp.float32) + b_ref[...])


# ---------------------------------------------------------------------------
# Parameter padding for lane-aligned gates (exact: pad lanes stay zero)
# ---------------------------------------------------------------------------
def _pad_gate_cols(w):
    """(..., 4*HIDDEN) -> (..., 4*HP), zero-padding inside each gate block."""
    lead = w.shape[:-1]
    w4 = w.reshape(lead + (4, HIDDEN))
    pads = [(0, 0)] * (len(lead) + 1) + [(0, HP - HIDDEN)]
    return jnp.pad(w4, pads).reshape(lead + (4 * HP,))


def _prepare_padded_params(params):
    pp = {}
    pp["w_ih_p"] = _pad_gate_cols(params["w_ih"])                       # (EMB3, 128)
    pp["b_gates_p"] = _pad_gate_cols(params["b_lstm"])                  # (1, 128)
    whh = _pad_gate_cols(params["w_hh"])                                # (H, 128)
    pp["w_hh_p"] = jnp.pad(whh, ((0, HP - HIDDEN), (0, 0)))             # (HP, 128)
    pp["w_out_p"] = jnp.pad(params["w_out"], ((0, HP - HIDDEN), (0, 0)))  # (HP, 3)
    return pp


# ---------------------------------------------------------------------------
# Wrapper
# ---------------------------------------------------------------------------
def lstm_tracker_forward(traj, params):
    T, B, D = traj.shape
    assert D == IN_DIM
    N = T * B
    NP = _round_up(N, 8)
    R = _pick_row_block(NP)          # row tile for the batched matmuls
    TC = _pick_time_chunk(T)         # timesteps per LSTM grid step

    pp = _prepare_padded_params(params)

    x2d = traj.reshape(N, IN_DIM)
    if NP != N:
        x2d = jnp.pad(x2d, ((0, NP - N), (0, 0)))

    wspec = lambda shape: pl.BlockSpec(shape, lambda i: (0,) * len(shape))

    # --- kernel 1: MLP + gates_x precompute (row-tiled, parallel) ---
    gx = pl.pallas_call(
        mlp_gates_kernel,
        out_shape=jax.ShapeDtypeStruct((NP, 4 * HP), jnp.float32),
        grid=(NP // R,),
        in_specs=[
            pl.BlockSpec((R, IN_DIM), lambda i: (i, 0)),
            wspec((IN_DIM, EMB1)), wspec((1, EMB1)),
            wspec((EMB1, EMB2)), wspec((1, EMB2)),
            wspec((EMB2, EMB3)), wspec((1, EMB3)),
            wspec((EMB3, 4 * HP)), wspec((1, 4 * HP)),
        ],
        out_specs=pl.BlockSpec((R, 4 * HP), lambda i: (i, 0)),
        compiler_params=pltpu.CompilerParams(
            dimension_semantics=("parallel",)),
    )(x2d,
      params["w1"], params["b1"],
      params["w2"], params["b2"],
      params["w3"], params["b3"],
      pp["w_ih_p"], pp["b_gates_p"])

    gx3 = gx[:N].reshape(T, B, 4 * HP)

    # --- kernel 2: LSTM recurrence (T chunks, sequential) ---
    hs = pl.pallas_call(
        lstm_recurrence_kernel,
        out_shape=jax.ShapeDtypeStruct((T, B, HP), jnp.float32),
        grid=(T // TC,),
        in_specs=[
            pl.BlockSpec((TC, B, 4 * HP), lambda c: (c, 0, 0)),
            pl.BlockSpec((HP, 4 * HP), lambda c: (0, 0)),
        ],
        out_specs=pl.BlockSpec((TC, B, HP), lambda c: (c, 0, 0)),
        scratch_shapes=[
            pltpu.VMEM((B, HP), jnp.float32),
            pltpu.VMEM((B, HP), jnp.float32),
        ],
        compiler_params=pltpu.CompilerParams(
            dimension_semantics=("arbitrary",)),
    )(gx3, pp["w_hh_p"])

    # --- kernel 3: bulk hidden2pos projection ---
    hs2d = hs.reshape(N, HP)
    if NP != N:
        hs2d = jnp.pad(hs2d, ((0, NP - N), (0, 0)))

    pos2d = pl.pallas_call(
        pos_projection_kernel,
        out_shape=jax.ShapeDtypeStruct((NP, OUT_DIM), jnp.float32),
        grid=(NP // R,),
        in_specs=[
            pl.BlockSpec((R, HP), lambda i: (i, 0)),
            wspec((HP, OUT_DIM)),
            wspec((1, OUT_DIM)),
        ],
        out_specs=pl.BlockSpec((R, OUT_DIM), lambda i: (i, 0)),
        compiler_params=pltpu.CompilerParams(
            dimension_semantics=("parallel",)),
    )(hs2d, pp["w_out_p"], params["b_out"])

    return pos2d[:N].reshape(T, B, OUT_DIM)


# ---------------------------------------------------------------------------
# Pure-JAX reference (for correctness check)
# ---------------------------------------------------------------------------
def ref_forward(traj, params):
    x = jax.nn.relu(traj @ params["w1"] + params["b1"][0])
    x = jax.nn.relu(x @ params["w2"] + params["b2"][0])
    x = jax.nn.relu(x @ params["w3"] + params["b3"][0])

    T, B, _ = x.shape
    H = HIDDEN

    def step(carry, x_t):
        h, c = carry
        gates = x_t @ params["w_ih"] + h @ params["w_hh"] + params["b_lstm"][0]
        i_g = jax.nn.sigmoid(gates[:, 0 * H:1 * H])
        f_g = jax.nn.sigmoid(gates[:, 1 * H:2 * H])
        g_g = jnp.tanh(gates[:, 2 * H:3 * H])
        o_g = jax.nn.sigmoid(gates[:, 3 * H:4 * H])
        c_new = f_g * c + i_g * g_g
        h_new = o_g * jnp.tanh(c_new)
        return (h_new, c_new), h_new

    h0 = jnp.zeros((B, H), jnp.float32)
    c0 = jnp.zeros((B, H), jnp.float32)
    _, hs = jax.lax.scan(step, (h0, c0), x)
    return hs @ params["w_out"] + params["b_out"][0]


# ---------------------------------------------------------------------------
# Deterministic parameter init (shapes match nn.Linear / nn.LSTM of the module)
# ---------------------------------------------------------------------------
def make_params(key):
    ks = jax.random.split(key, 12)
    u = lambda k, shape, s: jax.random.uniform(k, shape, jnp.float32, -s, s)
    return {
        # nn.Linear stores (out, in); we store transposed (in, out) for x @ W.
        "w1": u(ks[0], (IN_DIM, EMB1), 0.28),
        "b1": u(ks[1], (1, EMB1), 0.28),
        "w2": u(ks[2], (EMB1, EMB2), 0.08),
        "b2": u(ks[3], (1, EMB2), 0.08),
        "w3": u(ks[4], (EMB2, EMB3), 0.07),
        "b3": u(ks[5], (1, EMB3), 0.07),
        # nn.LSTM: W_ih (4H, EMB3), W_hh (4H, H); stored transposed.
        "w_ih": u(ks[6], (EMB3, 4 * HIDDEN), 0.18),
        "w_hh": u(ks[7], (HIDDEN, 4 * HIDDEN), 0.18),
        # combined b_ih + b_hh
        "b_lstm": u(ks[8], (1, 4 * HIDDEN), 0.18),
        "w_out": u(ks[9], (HIDDEN, OUT_DIM), 0.18),
        "b_out": u(ks[10], (1, OUT_DIM), 0.18),
    }


if __name__ == "__main__":
    key = jax.random.PRNGKey(0)
    pkey, xkey = jax.random.split(key)
    params = make_params(pkey)

    T, B = 8, 2
    traj = jax.random.normal(xkey, (T, B, IN_DIM), jnp.float32)

    out = jax.jit(lstm_tracker_forward)(traj, params)
    out = jax.block_until_ready(out)

    ref = ref_forward(traj, params)
    assert out.shape == (T, B, OUT_DIM)
    assert jnp.allclose(out, ref, atol=1e-4, rtol=1e-4), (
        f"max abs err = {jnp.max(jnp.abs(out - ref))}")

    print("KERNEL_OK")
</pallas_src>

<mosaic_0001>
module attributes {stable_mosaic.version = 11 : i64} {
  func.func @mlp_gates_kernel(%arg0: i32, %arg1: memref<16x12xf32, #tpu.memory_space<vmem>>, %arg2: memref<12x150xf32, #tpu.memory_space<vmem>>, %arg3: memref<1x150xf32, #tpu.memory_space<vmem>>, %arg4: memref<150x200xf32, #tpu.memory_space<vmem>>, %arg5: memref<1x200xf32, #tpu.memory_space<vmem>>, %arg6: memref<200x150xf32, #tpu.memory_space<vmem>>, %arg7: memref<1x150xf32, #tpu.memory_space<vmem>>, %arg8: memref<150x128xf32, #tpu.memory_space<vmem>>, %arg9: memref<1x128xf32, #tpu.memory_space<vmem>>, %arg10: memref<16x128xf32, #tpu.memory_space<vmem>>) attributes {dimension_semantics = [#tpu.dimension_semantics<parallel>], iteration_bounds = array<i64: 1>, scalar_prefetch = 0 : i64, scratch_operands = 0 : i64, tpu.core_type = #tpu.core_type<tc>, window_params = [{transform_indices = @transform_0, window_bounds = array<i64: 16, 12>}, {pipeline_mode = #tpu.pipeline_mode<synchronous>, transform_indices = @transform_1, window_bounds = array<i64: 12, 150>}, {pipeline_mode = #tpu.pipeline_mode<synchronous>, transform_indices = @transform_2, window_bounds = array<i64: 1, 150>}, {pipeline_mode = #tpu.pipeline_mode<synchronous>, transform_indices = @transform_3, window_bounds = array<i64: 150, 200>}, {pipeline_mode = #tpu.pipeline_mode<synchronous>, transform_indices = @transform_4, window_bounds = array<i64: 1, 200>}, {pipeline_mode = #tpu.pipeline_mode<synchronous>, transform_indices = @transform_5, window_bounds = array<i64: 200, 150>}, {pipeline_mode = #tpu.pipeline_mode<synchronous>, transform_indices = @transform_6, window_bounds = array<i64: 1, 150>}, {pipeline_mode = #tpu.pipeline_mode<synchronous>, transform_indices = @transform_7, window_bounds = array<i64: 150, 128>}, {pipeline_mode = #tpu.pipeline_mode<synchronous>, transform_indices = @transform_8, window_bounds = array<i64: 1, 128>}, {transform_indices = @transform_9, window_bounds = array<i64: 16, 128>}]} {
    %c0 = arith.constant 0 : index
    %c0_0 = arith.constant 0 : index
    %0 = vector.load %arg1[%c0, %c0_0] : memref<16x12xf32, #tpu.memory_space<vmem>>, vector<16x12xf32>
    %c0_1 = arith.constant 0 : index
    %c0_2 = arith.constant 0 : index
    %1 = vector.load %arg2[%c0_1, %c0_2] : memref<12x150xf32, #tpu.memory_space<vmem>>, vector<12x150xf32>
    %cst = arith.constant dense<0.000000e+00> : vector<16x150xf32>
    %2 = tpu.matmul %0, %1, %cst {dimension_numbers = #tpu.dot_dimension_numbers<[1], [0], [0], [1], [0, 0, 1, 1], [], []>} : vector<16x12xf32>, vector<12x150xf32>, vector<16x150xf32> -> vector<16x150xf32>
    %c0_3 = arith.constant 0 : index
    %c0_4 = arith.constant 0 : index
    %3 = vector.load %arg3[%c0_3, %c0_4] : memref<1x150xf32, #tpu.memory_space<vmem>>, vector<1x150xf32>
    %4 = vector.broadcast %3 : vector<1x150xf32> to vector<16x150xf32>
    %5 = arith.addf %2, %4 : vector<16x150xf32>
    %cst_5 = arith.constant 0.000000e+00 : f32
    %6 = vector.broadcast %cst_5 : f32 to vector<16x150xf32>
    %7 = arith.maximumf %5, %6 : vector<16x150xf32>
    %c0_6 = arith.constant 0 : index
    %c0_7 = arith.constant 0 : index
    %8 = vector.load %arg4[%c0_6, %c0_7] : memref<150x200xf32, #tpu.memory_space<vmem>>, vector<150x200xf32>
    %cst_8 = arith.constant dense<0.000000e+00> : vector<16x200xf32>
    %9 = tpu.matmul %7, %8, %cst_8 {dimension_numbers = #tpu.dot_dimension_numbers<[1], [0], [0], [1], [0, 0, 1, 1], [], []>} : vector<16x150xf32>, vector<150x200xf32>, vector<16x200xf32> -> vector<16x200xf32>
    %c0_9 = arith.constant 0 : index
    %c0_10 = arith.constant 0 : index
    %10 = vector.load %arg5[%c0_9, %c0_10] : memref<1x200xf32, #tpu.memory_space<vmem>>, vector<1x200xf32>
    %11 = vector.broadcast %10 : vector<1x200xf32> to vector<16x200xf32>
    %12 = arith.addf %9, %11 : vector<16x200xf32>
    %cst_11 = arith.constant 0.000000e+00 : f32
    %13 = vector.broadcast %cst_11 : f32 to vector<16x200xf32>
    %14 = arith.maximumf %12, %13 : vector<16x200xf32>
    %c0_12 = arith.constant 0 : index
    %c0_13 = arith.constant 0 : index
    %15 = vector.load %arg6[%c0_12, %c0_13] : memref<200x150xf32, #tpu.memory_space<vmem>>, vector<200x150xf32>
    %cst_14 = arith.constant dense<0.000000e+00> : vector<16x150xf32>
    %16 = tpu.matmul %14, %15, %cst_14 {dimension_numbers = #tpu.dot_dimension_numbers<[1], [0], [0], [1], [0, 0, 1, 1], [], []>} : vector<16x200xf32>, vector<200x150xf32>, vector<16x150xf32> -> vector<16x150xf32>
    %c0_15 = arith.constant 0 : index
    %c0_16 = arith.constant 0 : index
    %17 = vector.load %arg7[%c0_15, %c0_16] : memref<1x150xf32, #tpu.memory_space<vmem>>, vector<1x150xf32>
    %18 = vector.broadcast %17 : vector<1x150xf32> to vector<16x150xf32>
    %19 = arith.addf %16, %18 : vector<16x150xf32>
    %cst_17 = arith.constant 0.000000e+00 : f32
    %20 = vector.broadcast %cst_17 : f32 to vector<16x150xf32>
    %21 = arith.maximumf %19, %20 : vector<16x150xf32>
    %c0_18 = arith.constant 0 : index
    %c0_19 = arith.constant 0 : index
    %22 = vector.load %arg8[%c0_18, %c0_19] : memref<150x128xf32, #tpu.memory_space<vmem>>, vector<150x128xf32>
    %cst_20 = arith.constant dense<0.000000e+00> : vector<16x128xf32>
    %23 = tpu.matmul %21, %22, %cst_20 {dimension_numbers = #tpu.dot_dimension_numbers<[1], [0], [0], [1], [0, 0, 1, 1], [], []>} : vector<16x150xf32>, vector<150x128xf32>, vector<16x128xf32> -> vector<16x128xf32>
    %c0_21 = arith.constant 0 : index
    %c0_22 = arith.constant 0 : index
    %24 = vector.load %arg9[%c0_21, %c0_22] : memref<1x128xf32, #tpu.memory_space<vmem>>, vector<1x128xf32>
    %25 = vector.broadcast %24 : vector<1x128xf32> to vector<16x128xf32>
    %26 = arith.addf %23, %25 : vector<16x128xf32>
    %c0_23 = arith.constant 0 : index
    %c0_24 = arith.constant 0 : index
    %27 = vector.load %arg10[%c0_23, %c0_24] : memref<16x128xf32, #tpu.memory_space<vmem>>, vector<16x128xf32>
    tpu.vector_store %arg10[%c0_23, %c0_24], %26 {strides = array<i32>} : memref<16x128xf32, #tpu.memory_space<vmem>>, vector<16x128xf32>,
    return
  }
  func.func @transform_0(%arg0: i32) -> (i32, i32) {
    %c0_i32 = arith.constant 0 : i32
    %c0_i32_0 = arith.constant 0 : i32
    return %arg0, %c0_i32 : i32, i32
  }
  func.func @transform_1(%arg0: i32) -> (i32, i32) {
    %c0_i32 = arith.constant 0 : i32
    %c0_i32_0 = arith.constant 0 : i32
    %c0_i32_1 = arith.constant 0 : i32
    return %c0_i32, %c0_i32_0 : i32, i32
  }
  func.func @transform_2(%arg0: i32) -> (i32, i32) {
    %c0_i32 = arith.constant 0 : i32
    %c0_i32_0 = arith.constant 0 : i32
    %c0_i32_1 = arith.constant 0 : i32
    return %c0_i32, %c0_i32_0 : i32, i32
  }
  func.func @transform_3(%arg0: i32) -> (i32, i32) {
    %c0_i32 = arith.constant 0 : i32
    %c0_i32_0 = arith.constant 0 : i32
    %c0_i32_1 = arith.constant 0 : i32
    return %c0_i32, %c0_i32_0 : i32, i32
  }
  func.func @transform_4(%arg0: i32) -> (i32, i32) {
    %c0_i32 = arith.constant 0 : i32
    %c0_i32_0 = arith.constant 0 : i32
    %c0_i32_1 = arith.constant 0 : i32
    return %c0_i32, %c0_i32_0 : i32, i32
  }
  func.func @transform_5(%arg0: i32) -> (i32, i32) {
    %c0_i32 = arith.constant 0 : i32
    %c0_i32_0 = arith.constant 0 : i32
    %c0_i32_1 = arith.constant 0 : i32
    return %c0_i32, %c0_i32_0 : i32, i32
  }
  func.func @transform_6(%arg0: i32) -> (i32, i32) {
    %c0_i32 = arith.constant 0 : i32
    %c0_i32_0 = arith.constant 0 : i32
    %c0_i32_1 = arith.constant 0 : i32
    return %c0_i32, %c0_i32_0 : i32, i32
  }
  func.func @transform_7(%arg0: i32) -> (i32, i32) {
    %c0_i32 = arith.constant 0 : i32
    %c0_i32_0 = arith.constant 0 : i32
    %c0_i32_1 = arith.constant 0 : i32
    return %c0_i32, %c0_i32_0 : i32, i32
  }
  func.func @transform_8(%arg0: i32) -> (i32, i32) {
    %c0_i32 = arith.constant 0 : i32
    %c0_i32_0 = arith.constant 0 : i32
    %c0_i32_1 = arith.constant 0 : i32
    return %c0_i32, %c0_i32_0 : i32, i32
  }
  func.func @transform_9(%arg0: i32) -> (i32, i32) {
    %c0_i32 = arith.constant 0 : i32
    %c0_i32_0 = arith.constant 0 : i32
    return %arg0, %c0_i32 : i32, i32
  }
}

module attributes {stable_mosaic.version = 11 : i64} {
  func.func @pos_projection_kernel(%arg0: i32, %arg1: memref<16x32xf32, #tpu.memory_space<vmem>>, %arg2: memref<32x3xf32, #tpu.memory_space<vmem>>, %arg3: memref<1x3xf32, #tpu.memory_space<vmem>>, %arg4: memref<16x3xf32, #tpu.memory_space<vmem>>) attributes {dimension_semantics = [#tpu.dimension_semantics<parallel>], iteration_bounds = array<i64: 1>, scalar_prefetch = 0 : i64, scratch_operands = 0 : i64, tpu.core_type = #tpu.core_type<tc>, window_params = [{transform_indices = @transform_0, window_bounds = array<i64: 16, 32>}, {pipeline_mode = #tpu.pipeline_mode<synchronous>, transform_indices = @transform_1, window_bounds = array<i64: 32, 3>}, {pipeline_mode = #tpu.pipeline_mode<synchronous>, transform_indices = @transform_2, window_bounds = array<i64: 1, 3>}, {transform_indices = @transform_3, window_bounds = array<i64: 16, 3>}]} {
    %c0 = arith.constant 0 : index
    %c0_0 = arith.constant 0 : index
    %0 = vector.load %arg1[%c0, %c0_0] : memref<16x32xf32, #tpu.memory_space<vmem>>, vector<16x32xf32>
    %c0_1 = arith.constant 0 : index
    %c0_2 = arith.constant 0 : index
    %1 = vector.load %arg2[%c0_1, %c0_2] : memref<32x3xf32, #tpu.memory_space<vmem>>, vector<32x3xf32>
    %cst = arith.constant dense<0.000000e+00> : vector<16x3xf32>
    %2 = tpu.matmul %0, %1, %cst {dimension_numbers = #tpu.dot_dimension_numbers<[1], [0], [0], [1], [0, 0, 1, 1], [], []>} : vector<16x32xf32>, vector<32x3xf32>, vector<16x3xf32> -> vector<16x3xf32>
    %c0_3 = arith.constant 0 : index
    %c0_4 = arith.constant 0 : index
    %3 = vector.load %arg3[%c0_3, %c0_4] : memref<1x3xf32, #tpu.memory_space<vmem>>, vector<1x3xf32>
    %4 = vector.broadcast %3 : vector<1x3xf32> to vector<16x3xf32>
    %5 = arith.addf %2, %4 : vector<16x3xf32>
    %c0_5 = arith.constant 0 : index
    %c0_6 = arith.constant 0 : index
    %6 = vector.load %arg4[%c0_5, %c0_6] : memref<16x3xf32, #tpu.memory_space<vmem>>, vector<16x3xf32>
    tpu.vector_store %arg4[%c0_5, %c0_6], %5 {strides = array<i32>} : memref<16x3xf32, #tpu.memory_space<vmem>>, vector<16x3xf32>,
    return
  }
  func.func @transform_0(%arg0: i32) -> (i32, i32) {
    %c0_i32 = arith.constant 0 : i32
    %c0_i32_0 = arith.constant 0 : i32
    return %arg0, %c0_i32 : i32, i32
  }
  func.func @transform_1(%arg0: i32) -> (i32, i32) {
    %c0_i32 = arith.constant 0 : i32
    %c0_i32_0 = arith.constant 0 : i32
    %c0_i32_1 = arith.constant 0 : i32
    return %c0_i32, %c0_i32_0 : i32, i32
  }
  func.func @transform_2(%arg0: i32) -> (i32, i32) {
    %c0_i32 = arith.constant 0 : i32
    %c0_i32_0 = arith.constant 0 : i32
    %c0_i32_1 = arith.constant 0 : i32
    return %c0_i32, %c0_i32_0 : i32, i32
  }
  func.func @transform_3(%arg0: i32) -> (i32, i32) {
    %c0_i32 = arith.constant 0 : i32
    %c0_i32_0 = arith.constant 0 : i32
    return %arg0, %c0_i32 : i32, i32
  }
}

module attributes {stable_mosaic.version = 11 : i64} {
  func.func @lstm_recurrence_kernel(%arg0: i32, %arg1: memref<8x2x128xf32, #tpu.memory_space<vmem>>, %arg2: memref<32x128xf32, #tpu.memory_space<vmem>>, %arg3: memref<8x2x32xf32, #tpu.memory_space<vmem>>, %arg4: memref<2x32xf32, #tpu.memory_space<vmem>>, %arg5: memref<2x32xf32, #tpu.memory_space<vmem>>) attributes {dimension_semantics = [#tpu.dimension_semantics<arbitrary>], iteration_bounds = array<i64: 1>, scalar_prefetch = 0 : i64, scratch_operands = 2 : i64, tpu.core_type = #tpu.core_type<tc>, window_params = [{transform_indices = @transform_0, window_bounds = array<i64: 8, 2, 128>}, {pipeline_mode = #tpu.pipeline_mode<synchronous>, transform_indices = @transform_1, window_bounds = array<i64: 32, 128>}, {transform_indices = @transform_2, window_bounds = array<i64: 8, 2, 32>}]} {
    %c0_i32 = arith.constant 0 : i32
    %0 = arith.cmpi eq, %arg0, %c0_i32 : i32
    %1 = arith.extui %0 : i1 to i32
    %c0_i32_0 = arith.constant 0 : i32
    %2 = arith.cmpi ne, %1, %c0_i32_0 : i32
    scf.if %2 {
      %cst_74 = arith.constant 0.000000e+00 : f32
      %280 = vector.broadcast %cst_74 : f32 to vector<2x32xf32>
      %c0_75 = arith.constant 0 : index
      %c0_76 = arith.constant 0 : index
      %281 = vector.load %arg4[%c0_75, %c0_76] : memref<2x32xf32, #tpu.memory_space<vmem>>, vector<2x32xf32>
      tpu.vector_store %arg4[%c0_75, %c0_76], %280 {strides = array<i32>} : memref<2x32xf32, #tpu.memory_space<vmem>>, vector<2x32xf32>,
      %cst_77 = arith.constant 0.000000e+00 : f32
      %282 = vector.broadcast %cst_77 : f32 to vector<2x32xf32>
      %c0_78 = arith.constant 0 : index
      %c0_79 = arith.constant 0 : index
      %283 = vector.load %arg5[%c0_78, %c0_79] : memref<2x32xf32, #tpu.memory_space<vmem>>, vector<2x32xf32>
      tpu.vector_store %arg5[%c0_78, %c0_79], %282 {strides = array<i32>} : memref<2x32xf32, #tpu.memory_space<vmem>>, vector<2x32xf32>,
    } else {
    }
    %c0 = arith.constant 0 : index
    %c0_1 = arith.constant 0 : index
    %3 = vector.load %arg2[%c0, %c0_1] : memref<32x128xf32, #tpu.memory_space<vmem>>, vector<32x128xf32>
    %c0_2 = arith.constant 0 : index
    %c0_3 = arith.constant 0 : index
    %4 = vector.load %arg4[%c0_2, %c0_3] : memref<2x32xf32, #tpu.memory_space<vmem>>, vector<2x32xf32>
    %c0_4 = arith.constant 0 : index
    %c0_5 = arith.constant 0 : index
    %5 = vector.load %arg5[%c0_4, %c0_5] : memref<2x32xf32, #tpu.memory_space<vmem>>, vector<2x32xf32>
    %c0_i32_6 = arith.constant 0 : i32
    %6 = arith.index_cast %c0_i32_6 : i32 to index
    %c0_7 = arith.constant 0 : index
    %c0_8 = arith.constant 0 : index
    %7 = vector.load %arg1[%6, %c0_7, %c0_8] : memref<8x2x128xf32, #tpu.memory_space<vmem>>, vector<1x2x128xf32>
    %8 = vector.shape_cast %7 : vector<1x2x128xf32> to vector<2x128xf32>
    %cst = arith.constant dense<0.000000e+00> : vector<2x128xf32>
    %9 = tpu.matmul %4, %3, %cst {dimension_numbers = #tpu.dot_dimension_numbers<[1], [0], [0], [1], [0, 0, 1, 1], [], []>} : vector<2x32xf32>, vector<32x128xf32>, vector<2x128xf32> -> vector<2x128xf32>
    %10 = arith.addf %8, %9 : vector<2x128xf32>
    %11 = vector.extract_strided_slice %10 {offsets = [0, 0], sizes = [2, 32], strides = [1, 1]} : vector<2x128xf32> to vector<2x32xf32>
    %12 = arith.negf %11 : vector<2x32xf32>
    %13 = math.exp %12 : vector<2x32xf32>
    %cst_9 = arith.constant 1.000000e+00 : f32
    %14 = vector.broadcast %cst_9 : f32 to vector<2x32xf32>
    %15 = arith.addf %14, %13 : vector<2x32xf32>
    %16 = arith.divf %14, %15 : vector<2x32xf32>
    %17 = vector.extract_strided_slice %10 {offsets = [0, 32], sizes = [2, 32], strides = [1, 1]} : vector<2x128xf32> to vector<2x32xf32>
    %18 = arith.negf %17 : vector<2x32xf32>
    %19 = math.exp %18 : vector<2x32xf32>
    %cst_10 = arith.constant 1.000000e+00 : f32
    %20 = vector.broadcast %cst_10 : f32 to vector<2x32xf32>
    %21 = arith.addf %20, %19 : vector<2x32xf32>
    %22 = arith.divf %20, %21 : vector<2x32xf32>
    %23 = vector.extract_strided_slice %10 {offsets = [0, 64], sizes = [2, 32], strides = [1, 1]} : vector<2x128xf32> to vector<2x32xf32>
    %24 = math.tanh %23 : vector<2x32xf32>
    %25 = vector.extract_strided_slice %10 {offsets = [0, 96], sizes = [2, 32], strides = [1, 1]} : vector<2x128xf32> to vector<2x32xf32>
    %26 = arith.negf %25 : vector<2x32xf32>
    %27 = math.exp %26 : vector<2x32xf32>
    %cst_11 = arith.constant 1.000000e+00 : f32
    %28 = vector.broadcast %cst_11 : f32 to vector<2x32xf32>
    %29 = arith.addf %28, %27 : vector<2x32xf32>
    %30 = arith.divf %28, %29 : vector<2x32xf32>
    %31 = arith.mulf %22, %5 : vector<2x32xf32>
    %32 = arith.mulf %16, %24 : vector<2x32xf32>
    %33 = arith.addf %31, %32 : vector<2x32xf32>
    %34 = math.tanh %33 : vector<2x32xf32>
    %35 = arith.mulf %30, %34 : vector<2x32xf32>
    %36 = arith.index_cast %c0_i32_6 : i32 to index
    %c0_12 = arith.constant 0 : index
    %c0_13 = arith.constant 0 : index
    %37 = vector.load %arg3[%36, %c0_12, %c0_13] : memref<8x2x32xf32, #tpu.memory_space<vmem>>, vector<1x2x32xf32>
    %38 = vector.shape_cast %37 : vector<1x2x32xf32> to vector<2x32xf32>
    %39 = vector.shape_cast %35 : vector<2x32xf32> to vector<1x2x32xf32>
    tpu.vector_store %arg3[%36, %c0_12, %c0_13], %39 {strides = array<i32>} : memref<8x2x32xf32, #tpu.memory_space<vmem>>, vector<1x2x32xf32>,
    %c1_i32 = arith.constant 1 : i32
    %40 = arith.index_cast %c1_i32 : i32 to index
    %c0_14 = arith.constant 0 : index
    %c0_15 = arith.constant 0 : index
    %41 = vector.load %arg1[%40, %c0_14, %c0_15] : memref<8x2x128xf32, #tpu.memory_space<vmem>>, vector<1x2x128xf32>
    %42 = vector.shape_cast %41 : vector<1x2x128xf32> to vector<2x128xf32>
    %cst_16 = arith.constant dense<0.000000e+00> : vector<2x128xf32>
    %43 = tpu.matmul %35, %3, %cst_16 {dimension_numbers = #tpu.dot_dimension_numbers<[1], [0], [0], [1], [0, 0, 1, 1], [], []>} : vector<2x32xf32>, vector<32x128xf32>, vector<2x128xf32> -> vector<2x128xf32>
    %44 = arith.addf %42, %43 : vector<2x128xf32>
    %45 = vector.extract_strided_slice %44 {offsets = [0, 0], sizes = [2, 32], strides = [1, 1]} : vector<2x128xf32> to vector<2x32xf32>
    %46 = arith.negf %45 : vector<2x32xf32>
    %47 = math.exp %46 : vector<2x32xf32>
    %cst_17 = arith.constant 1.000000e+00 : f32
    %48 = vector.broadcast %cst_17 : f32 to vector<2x32xf32>
    %49 = arith.addf %48, %47 : vector<2x32xf32>
    %50 = arith.divf %48, %49 : vector<2x32xf32>
    %51 = vector.extract_strided_slice %44 {offsets = [0, 32], sizes = [2, 32], strides = [1, 1]} : vector<2x128xf32> to vector<2x32xf32>
    %52 = arith.negf %51 : vector<2x32xf32>
    %53 = math.exp %52 : vector<2x32xf32>
    %cst_18 = arith.constant 1.000000e+00 : f32
    %54 = vector.broadcast %cst_18 : f32 to vector<2x32xf32>
    %55 = arith.addf %54, %53 : vector<2x32xf32>
    %56 = arith.divf %54, %55 : vector<2x32xf32>
    %57 = vector.extract_strided_slice %44 {offsets = [0, 64], sizes = [2, 32], strides = [1, 1]} : vector<2x128xf32> to vector<2x32xf32>
    %58 = math.tanh %57 : vector<2x32xf32>
    %59 = vector.extract_strided_slice %44 {offsets = [0, 96], sizes = [2, 32], strides = [1, 1]} : vector<2x128xf32> to vector<2x32xf32>
    %60 = arith.negf %59 : vector<2x32xf32>
    %61 = math.exp %60 : vector<2x32xf32>
    %cst_19 = arith.constant 1.000000e+00 : f32
    %62 = vector.broadcast %cst_19 : f32 to vector<2x32xf32>
    %63 = arith.addf %62, %61 : vector<2x32xf32>
    %64 = arith.divf %62, %63 : vector<2x32xf32>
    %65 = arith.mulf %56, %33 : vector<2x32xf32>
    %66 = arith.mulf %50, %58 : vector<2x32xf32>
    %67 = arith.addf %65, %66 : vector<2x32xf32>
    %68 = math.tanh %67 : vector<2x32xf32>
    %69 = arith.mulf %64, %68 : vector<2x32xf32>
    %70 = arith.index_cast %c1_i32 : i32 to index
    %c0_20 = arith.constant 0 : index
    %c0_21 = arith.constant 0 : index
    %71 = vector.load %arg3[%70, %c0_20, %c0_21] : memref<8x2x32xf32, #tpu.memory_space<vmem>>, vector<1x2x32xf32>
    %72 = vector.shape_cast %71 : vector<1x2x32xf32> to vector<2x32xf32>
    %73 = vector.shape_cast %69 : vector<2x32xf32> to vector<1x2x32xf32>
    tpu.vector_store %arg3[%70, %c0_20, %c0_21], %73 {strides = array<i32>} : memref<8x2x32xf32, #tpu.memory_space<vmem>>, vector<1x2x32xf32>,
    %c2_i32 = arith.constant 2 : i32
    %74 = arith.index_cast %c2_i32 : i32 to index
    %c0_22 = arith.constant 0 : index
    %c0_23 = arith.constant 0 : index
    %75 = vector.load %arg1[%74, %c0_22, %c0_23] : memref<8x2x128xf32, #tpu.memory_space<vmem>>, vector<1x2x128xf32>
    %76 = vector.shape_cast %75 : vector<1x2x128xf32> to vector<2x128xf32>
    %cst_24 = arith.constant dense<0.000000e+00> : vector<2x128xf32>
    %77 = tpu.matmul %69, %3, %cst_24 {dimension_numbers = #tpu.dot_dimension_numbers<[1], [0], [0], [1], [0, 0, 1, 1], [], []>} : vector<2x32xf32>, vector<32x128xf32>, vector<2x128xf32> -> vector<2x128xf32>
    %78 = arith.addf %76, %77 : vector<2x128xf32>
    %79 = vector.extract_strided_slice %78 {offsets = [0, 0], sizes = [2, 32], strides = [1, 1]} : vector<2x128xf32> to vector<2x32xf32>
    %80 = arith.negf %79 : vector<2x32xf32>
    %81 = math.exp %80 : vector<2x32xf32>
    %cst_25 = arith.constant 1.000000e+00 : f32
    %82 = vector.broadcast %cst_25 : f32 to vector<2x32xf32>
    %83 = arith.addf %82, %81 : vector<2x32xf32>
    %84 = arith.divf %82, %83 : vector<2x32xf32>
    %85 = vector.extract_strided_slice %78 {offsets = [0, 32], sizes = [2, 32], strides = [1, 1]} : vector<2x128xf32> to vector<2x32xf32>
    %86 = arith.negf %85 : vector<2x32xf32>
    %87 = math.exp %86 : vector<2x32xf32>
    %cst_26 = arith.constant 1.000000e+00 : f32
    %88 = vector.broadcast %cst_26 : f32 to vector<2x32xf32>
    %89 = arith.addf %88, %87 : vector<2x32xf32>
    %90 = arith.divf %88, %89 : vector<2x32xf32>
    %91 = vector.extract_strided_slice %78 {offsets = [0, 64], sizes = [2, 32], strides = [1, 1]} : vector<2x128xf32> to vector<2x32xf32>
    %92 = math.tanh %91 : vector<2x32xf32>
    %93 = vector.extract_strided_slice %78 {offsets = [0, 96], sizes = [2, 32], strides = [1, 1]} : vector<2x128xf32> to vector<2x32xf32>
    %94 = arith.negf %93 : vector<2x32xf32>
    %95 = math.exp %94 : vector<2x32xf32>
    %cst_27 = arith.constant 1.000000e+00 : f32
    %96 = vector.broadcast %cst_27 : f32 to vector<2x32xf32>
    %97 = arith.addf %96, %95 : vector<2x32xf32>
    %98 = arith.divf %96, %97 : vector<2x32xf32>
    %99 = arith.mulf %90, %67 : vector<2x32xf32>
    %100 = arith.mulf %84, %92 : vector<2x32xf32>
    %101 = arith.addf %99, %100 : vector<2x32xf32>
    %102 = math.tanh %101 : vector<2x32xf32>
    %103 = arith.mulf %98, %102 : vector<2x32xf32>
    %104 = arith.index_cast %c2_i32 : i32 to index
    %c0_28 = arith.constant 0 : index
    %c0_29 = arith.constant 0 : index
    %105 = vector.load %arg3[%104, %c0_28, %c0_29] : memref<8x2x32xf32, #tpu.memory_space<vmem>>, vector<1x2x32xf32>
    %106 = vector.shape_cast %105 : vector<1x2x32xf32> to vector<2x32xf32>
    %107 = vector.shape_cast %103 : vector<2x32xf32> to vector<1x2x32xf32>
    tpu.vector_store %arg3[%104, %c0_28, %c0_29], %107 {strides = array<i32>} : memref<8x2x32xf32, #tpu.memory_space<vmem>>, vector<1x2x32xf32>,
    %c3_i32 = arith.constant 3 : i32
    %108 = arith.index_cast %c3_i32 : i32 to index
    %c0_30 = arith.constant 0 : index
    %c0_31 = arith.constant 0 : index
    %109 = vector.load %arg1[%108, %c0_30, %c0_31] : memref<8x2x128xf32, #tpu.memory_space<vmem>>, vector<1x2x128xf32>
    %110 = vector.shape_cast %109 : vector<1x2x128xf32> to vector<2x128xf32>
    %cst_32 = arith.constant dense<0.000000e+00> : vector<2x128xf32>
    %111 = tpu.matmul %103, %3, %cst_32 {dimension_numbers = #tpu.dot_dimension_numbers<[1], [0], [0], [1], [0, 0, 1, 1], [], []>} : vector<2x32xf32>, vector<32x128xf32>, vector<2x128xf32> -> vector<2x128xf32>
    %112 = arith.addf %110, %111 : vector<2x128xf32>
    %113 = vector.extract_strided_slice %112 {offsets = [0, 0], sizes = [2, 32], strides = [1, 1]} : vector<2x128xf32> to vector<2x32xf32>
    %114 = arith.negf %113 : vector<2x32xf32>
    %115 = math.exp %114 : vector<2x32xf32>
    %cst_33 = arith.constant 1.000000e+00 : f32
    %116 = vector.broadcast %cst_33 : f32 to vector<2x32xf32>
    %117 = arith.addf %116, %115 : vector<2x32xf32>
    %118 = arith.divf %116, %117 : vector<2x32xf32>
    %119 = vector.extract_strided_slice %112 {offsets = [0, 32], sizes = [2, 32], strides = [1, 1]} : vector<2x128xf32> to vector<2x32xf32>
    %120 = arith.negf %119 : vector<2x32xf32>
    %121 = math.exp %120 : vector<2x32xf32>
    %cst_34 = arith.constant 1.000000e+00 : f32
    %122 = vector.broadcast %cst_34 : f32 to vector<2x32xf32>
    %123 = arith.addf %122, %121 : vector<2x32xf32>
    %124 = arith.divf %122, %123 : vector<2x32xf32>
    %125 = vector.extract_strided_slice %112 {offsets = [0, 64], sizes = [2, 32], strides = [1, 1]} : vector<2x128xf32> to vector<2x32xf32>
    %126 = math.tanh %125 : vector<2x32xf32>
    %127 = vector.extract_strided_slice %112 {offsets = [0, 96], sizes = [2, 32], strides = [1, 1]} : vector<2x128xf32> to vector<2x32xf32>
    %128 = arith.negf %127 : vector<2x32xf32>
    %129 = math.exp %128 : vector<2x32xf32>
    %cst_35 = arith.constant 1.000000e+00 : f32
    %130 = vector.broadcast %cst_35 : f32 to vector<2x32xf32>
    %131 = arith.addf %130, %129 : vector<2x32xf32>
    %132 = arith.divf %130, %131 : vector<2x32xf32>
    %133 = arith.mulf %124, %101 : vector<2x32xf32>
    %134 = arith.mulf %118, %126 : vector<2x32xf32>
    %135 = arith.addf %133, %134 : vector<2x32xf32>
    %136 = math.tanh %135 : vector<2x32xf32>
    %137 = arith.mulf %132, %136 : vector<2x32xf32>
    %138 = arith.index_cast %c3_i32 : i32 to index
    %c0_36 = arith.constant 0 : index
    %c0_37 = arith.constant 0 : index
    %139 = vector.load %arg3[%138, %c0_36, %c0_37] : memref<8x2x32xf32, #tpu.memory_space<vmem>>, vector<1x2x32xf32>
    %140 = vector.shape_cast %139 : vector<1x2x32xf32> to vector<2x32xf32>
    %141 = vector.shape_cast %137 : vector<2x32xf32> to vector<1x2x32xf32>
    tpu.vector_store %arg3[%138, %c0_36, %c0_37], %141 {strides = array<i32>} : memref<8x2x32xf32, #tpu.memory_space<vmem>>, vector<1x2x32xf32>,
    %c4_i32 = arith.constant 4 : i32
    %142 = arith.index_cast %c4_i32 : i32 to index
    %c0_38 = arith.constant 0 : index
    %c0_39 = arith.constant 0 : index
    %143 = vector.load %arg1[%142, %c0_38, %c0_39] : memref<8x2x128xf32, #tpu.memory_space<vmem>>, vector<1x2x128xf32>
    %144 = vector.shape_cast %143 : vector<1x2x128xf32> to vector<2x128xf32>
    %cst_40 = arith.constant dense<0.000000e+00> : vector<2x128xf32>
    %145 = tpu.matmul %137, %3, %cst_40 {dimension_numbers = #tpu.dot_dimension_numbers<[1], [0], [0], [1], [0, 0, 1, 1], [], []>} : vector<2x32xf32>, vector<32x128xf32>, vector<2x128xf32> -> vector<2x128xf32>
    %146 = arith.addf %144, %145 : vector<2x128xf32>
    %147 = vector.extract_strided_slice %146 {offsets = [0, 0], sizes = [2, 32], strides = [1, 1]} : vector<2x128xf32> to vector<2x32xf32>
    %148 = arith.negf %147 : vector<2x32xf32>
    %149 = math.exp %148 : vector<2x32xf32>
    %cst_41 = arith.constant 1.000000e+00 : f32
    %150 = vector.broadcast %cst_41 : f32 to vector<2x32xf32>
    %151 = arith.addf %150, %149 : vector<2x32xf32>
    %152 = arith.divf %150, %151 : vector<2x32xf32>
    %153 = vector.extract_strided_slice %146 {offsets = [0, 32], sizes = [2, 32], strides = [1, 1]} : vector<2x128xf32> to vector<2x32xf32>
    %154 = arith.negf %153 : vector<2x32xf32>
    %155 = math.exp %154 : vector<2x32xf32>
    %cst_42 = arith.constant 1.000000e+00 : f32
    %156 = vector.broadcast %cst_42 : f32 to vector<2x32xf32>
    %157 = arith.addf %156, %155 : vector<2x32xf32>
    %158 = arith.divf %156, %157 : vector<2x32xf32>
    %159 = vector.extract_strided_slice %146 {offsets = [0, 64], sizes = [2, 32], strides = [1, 1]} : vector<2x128xf32> to vector<2x32xf32>
    %160 = math.tanh %159 : vector<2x32xf32>
    %161 = vector.extract_strided_slice %146 {offsets = [0, 96], sizes = [2, 32], strides = [1, 1]} : vector<2x128xf32> to vector<2x32xf32>
    %162 = arith.negf %161 : vector<2x32xf32>
    %163 = math.exp %162 : vector<2x32xf32>
    %cst_43 = arith.constant 1.000000e+00 : f32
    %164 = vector.broadcast %cst_43 : f32 to vector<2x32xf32>
    %165 = arith.addf %164, %163 : vector<2x32xf32>
    %166 = arith.divf %164, %165 : vector<2x32xf32>
    %167 = arith.mulf %158, %135 : vector<2x32xf32>
    %168 = arith.mulf %152, %160 : vector<2x32xf32>
    %169 = arith.addf %167, %168 : vector<2x32xf32>
    %170 = math.tanh %169 : vector<2x32xf32>
    %171 = arith.mulf %166, %170 : vector<2x32xf32>
    %172 = arith.index_cast %c4_i32 : i32 to index
    %c0_44 = arith.constant 0 : index
    %c0_45 = arith.constant 0 : index
    %173 = vector.load %arg3[%172, %c0_44, %c0_45] : memref<8x2x32xf32, #tpu.memory_space<vmem>>, vector<1x2x32xf32>
    %174 = vector.shape_cast %173 : vector<1x2x32xf32> to vector<2x32xf32>
    %175 = vector.shape_cast %171 : vector<2x32xf32> to vector<1x2x32xf32>
    tpu.vector_store %arg3[%172, %c0_44, %c0_45], %175 {strides = array<i32>} : memref<8x2x32xf32, #tpu.memory_space<vmem>>, vector<1x2x32xf32>,
    %c5_i32 = arith.constant 5 : i32
    %176 = arith.index_cast %c5_i32 : i32 to index
    %c0_46 = arith.constant 0 : index
    %c0_47 = arith.constant 0 : index
    %177 = vector.load %arg1[%176, %c0_46, %c0_47] : memref<8x2x128xf32, #tpu.memory_space<vmem>>, vector<1x2x128xf32>
    %178 = vector.shape_cast %177 : vector<1x2x128xf32> to vector<2x128xf32>
    %cst_48 = arith.constant dense<0.000000e+00> : vector<2x128xf32>
    %179 = tpu.matmul %171, %3, %cst_48 {dimension_numbers = #tpu.dot_dimension_numbers<[1], [0], [0], [1], [0, 0, 1, 1], [], []>} : vector<2x32xf32>, vector<32x128xf32>, vector<2x128xf32> -> vector<2x128xf32>
    %180 = arith.addf %178, %179 : vector<2x128xf32>
    %181 = vector.extract_strided_slice %180 {offsets = [0, 0], sizes = [2, 32], strides = [1, 1]} : vector<2x128xf32> to vector<2x32xf32>
    %182 = arith.negf %181 : vector<2x32xf32>
    %183 = math.exp %182 : vector<2x32xf32>
    %cst_49 = arith.constant 1.000000e+00 : f32
    %184 = vector.broadcast %cst_49 : f32 to vector<2x32xf32>
    %185 = arith.addf %184, %183 : vector<2x32xf32>
    %186 = arith.divf %184, %185 : vector<2x32xf32>
    %187 = vector.extract_strided_slice %180 {offsets = [0, 32], sizes = [2, 32], strides = [1, 1]} : vector<2x128xf32> to vector<2x32xf32>
    %188 = arith.negf %187 : vector<2x32xf32>
    %189 = math.exp %188 : vector<2x32xf32>
    %cst_50 = arith.constant 1.000000e+00 : f32
    %190 = vector.broadcast %cst_50 : f32 to vector<2x32xf32>
    %191 = arith.addf %190, %189 : vector<2x32xf32>
    %192 = arith.divf %190, %191 : vector<2x32xf32>
    %193 = vector.extract_strided_slice %180 {offsets = [0, 64], sizes = [2, 32], strides = [1, 1]} : vector<2x128xf32> to vector<2x32xf32>
    %194 = math.tanh %193 : vector<2x32xf32>
    %195 = vector.extract_strided_slice %180 {offsets = [0, 96], sizes = [2, 32], strides = [1, 1]} : vector<2x128xf32> to vector<2x32xf32>
    %196 = arith.negf %195 : vector<2x32xf32>
    %197 = math.exp %196 : vector<2x32xf32>
    %cst_51 = arith.constant 1.000000e+00 : f32
    %198 = vector.broadcast %cst_51 : f32 to vector<2x32xf32>
    %199 = arith.addf %198, %197 : vector<2x32xf32>
    %200 = arith.divf %198, %199 : vector<2x32xf32>
    %201 = arith.mulf %192, %169 : vector<2x32xf32>
    %202 = arith.mulf %186, %194 : vector<2x32xf32>
    %203 = arith.addf %201, %202 : vector<2x32xf32>
    %204 = math.tanh %203 : vector<2x32xf32>
    %205 = arith.mulf %200, %204 : vector<2x32xf32>
    %206 = arith.index_cast %c5_i32 : i32 to index
    %c0_52 = arith.constant 0 : index
    %c0_53 = arith.constant 0 : index
    %207 = vector.load %arg3[%206, %c0_52, %c0_53] : memref<8x2x32xf32, #tpu.memory_space<vmem>>, vector<1x2x32xf32>
    %208 = vector.shape_cast %207 : vector<1x2x32xf32> to vector<2x32xf32>
    %209 = vector.shape_cast %205 : vector<2x32xf32> to vector<1x2x32xf32>
    tpu.vector_store %arg3[%206, %c0_52, %c0_53], %209 {strides = array<i32>} : memref<8x2x32xf32, #tpu.memory_space<vmem>>, vector<1x2x32xf32>,
    %c6_i32 = arith.constant 6 : i32
    %210 = arith.index_cast %c6_i32 : i32 to index
    %c0_54 = arith.constant 0 : index
    %c0_55 = arith.constant 0 : index
    %211 = vector.load %arg1[%210, %c0_54, %c0_55] : memref<8x2x128xf32, #tpu.memory_space<vmem>>, vector<1x2x128xf32>
    %212 = vector.shape_cast %211 : vector<1x2x128xf32> to vector<2x128xf32>
    %cst_56 = arith.constant dense<0.000000e+00> : vector<2x128xf32>
    %213 = tpu.matmul %205, %3, %cst_56 {dimension_numbers = #tpu.dot_dimension_numbers<[1], [0], [0], [1], [0, 0, 1, 1], [], []>} : vector<2x32xf32>, vector<32x128xf32>, vector<2x128xf32> -> vector<2x128xf32>
    %214 = arith.addf %212, %213 : vector<2x128xf32>
    %215 = vector.extract_strided_slice %214 {offsets = [0, 0], sizes = [2, 32], strides = [1, 1]} : vector<2x128xf32> to vector<2x32xf32>
    %216 = arith.negf %215 : vector<2x32xf32>
    %217 = math.exp %216 : vector<2x32xf32>
    %cst_57 = arith.constant 1.000000e+00 : f32
    %218 = vector.broadcast %cst_57 : f32 to vector<2x32xf32>
    %219 = arith.addf %218, %217 : vector<2x32xf32>
    %220 = arith.divf %218, %219 : vector<2x32xf32>
    %221 = vector.extract_strided_slice %214 {offsets = [0, 32], sizes = [2, 32], strides = [1, 1]} : vector<2x128xf32> to vector<2x32xf32>
    %222 = arith.negf %221 : vector<2x32xf32>
    %223 = math.exp %222 : vector<2x32xf32>
    %cst_58 = arith.constant 1.000000e+00 : f32
    %224 = vector.broadcast %cst_58 : f32 to vector<2x32xf32>
    %225 = arith.addf %224, %223 : vector<2x32xf32>
    %226 = arith.divf %224, %225 : vector<2x32xf32>
    %227 = vector.extract_strided_slice %214 {offsets = [0, 64], sizes = [2, 32], strides = [1, 1]} : vector<2x128xf32> to vector<2x32xf32>
    %228 = math.tanh %227 : vector<2x32xf32>
    %229 = vector.extract_strided_slice %214 {offsets = [0, 96], sizes = [2, 32], strides = [1, 1]} : vector<2x128xf32> to vector<2x32xf32>
    %230 = arith.negf %229 : vector<2x32xf32>
    %231 = math.exp %230 : vector<2x32xf32>
    %cst_59 = arith.constant 1.000000e+00 : f32
    %232 = vector.broadcast %cst_59 : f32 to vector<2x32xf32>
    %233 = arith.addf %232, %231 : vector<2x32xf32>
    %234 = arith.divf %232, %233 : vector<2x32xf32>
    %235 = arith.mulf %226, %203 : vector<2x32xf32>
    %236 = arith.mulf %220, %228 : vector<2x32xf32>
    %237 = arith.addf %235, %236 : vector<2x32xf32>
    %238 = math.tanh %237 : vector<2x32xf32>
    %239 = arith.mulf %234, %238 : vector<2x32xf32>
    %240 = arith.index_cast %c6_i32 : i32 to index
    %c0_60 = arith.constant 0 : index
    %c0_61 = arith.constant 0 : index
    %241 = vector.load %arg3[%240, %c0_60, %c0_61] : memref<8x2x32xf32, #tpu.memory_space<vmem>>, vector<1x2x32xf32>
    %242 = vector.shape_cast %241 : vector<1x2x32xf32> to vector<2x32xf32>
    %243 = vector.shape_cast %239 : vector<2x32xf32> to vector<1x2x32xf32>
    tpu.vector_store %arg3[%240, %c0_60, %c0_61], %243 {strides = array<i32>} : memref<8x2x32xf32, #tpu.memory_space<vmem>>, vector<1x2x32xf32>,
    %c7_i32 = arith.constant 7 : i32
    %244 = arith.index_cast %c7_i32 : i32 to index
    %c0_62 = arith.constant 0 : index
    %c0_63 = arith.constant 0 : index
    %245 = vector.load %arg1[%244, %c0_62, %c0_63] : memref<8x2x128xf32, #tpu.memory_space<vmem>>, vector<1x2x128xf32>
    %246 = vector.shape_cast %245 : vector<1x2x128xf32> to vector<2x128xf32>
    %cst_64 = arith.constant dense<0.000000e+00> : vector<2x128xf32>
    %247 = tpu.matmul %239, %3, %cst_64 {dimension_numbers = #tpu.dot_dimension_numbers<[1], [0], [0], [1], [0, 0, 1, 1], [], []>} : vector<2x32xf32>, vector<32x128xf32>, vector<2x128xf32> -> vector<2x128xf32>
    %248 = arith.addf %246, %247 : vector<2x128xf32>
    %249 = vector.extract_strided_slice %248 {offsets = [0, 0], sizes = [2, 32], strides = [1, 1]} : vector<2x128xf32> to vector<2x32xf32>
    %250 = arith.negf %249 : vector<2x32xf32>
    %251 = math.exp %250 : vector<2x32xf32>
    %cst_65 = arith.constant 1.000000e+00 : f32
    %252 = vector.broadcast %cst_65 : f32 to vector<2x32xf32>
    %253 = arith.addf %252, %251 : vector<2x32xf32>
    %254 = arith.divf %252, %253 : vector<2x32xf32>
    %255 = vector.extract_strided_slice %248 {offsets = [0, 32], sizes = [2, 32], strides = [1, 1]} : vector<2x128xf32> to vector<2x32xf32>
    %256 = arith.negf %255 : vector<2x32xf32>
    %257 = math.exp %256 : vector<2x32xf32>
    %cst_66 = arith.constant 1.000000e+00 : f32
    %258 = vector.broadcast %cst_66 : f32 to vector<2x32xf32>
    %259 = arith.addf %258, %257 : vector<2x32xf32>
    %260 = arith.divf %258, %259 : vector<2x32xf32>
    %261 = vector.extract_strided_slice %248 {offsets = [0, 64], sizes = [2, 32], strides = [1, 1]} : vector<2x128xf32> to vector<2x32xf32>
    %262 = math.tanh %261 : vector<2x32xf32>
    %263 = vector.extract_strided_slice %248 {offsets = [0, 96], sizes = [2, 32], strides = [1, 1]} : vector<2x128xf32> to vector<2x32xf32>
    %264 = arith.negf %263 : vector<2x32xf32>
    %265 = math.exp %264 : vector<2x32xf32>
    %cst_67 = arith.constant 1.000000e+00 : f32
    %266 = vector.broadcast %cst_67 : f32 to vector<2x32xf32>
    %267 = arith.addf %266, %265 : vector<2x32xf32>
    %268 = arith.divf %266, %267 : vector<2x32xf32>
    %269 = arith.mulf %260, %237 : vector<2x32xf32>
    %270 = arith.mulf %254, %262 : vector<2x32xf32>
    %271 = arith.addf %269, %270 : vector<2x32xf32>
    %272 = math.tanh %271 : vector<2x32xf32>
    %273 = arith.mulf %268, %272 : vector<2x32xf32>
    %274 = arith.index_cast %c7_i32 : i32 to index
    %c0_68 = arith.constant 0 : index
    %c0_69 = arith.constant 0 : index
    %275 = vector.load %arg3[%274, %c0_68, %c0_69] : memref<8x2x32xf32, #tpu.memory_space<vmem>>, vector<1x2x32xf32>
    %276 = vector.shape_cast %275 : vector<1x2x32xf32> to vector<2x32xf32>
    %277 = vector.shape_cast %273 : vector<2x32xf32> to vector<1x2x32xf32>
    tpu.vector_store %arg3[%274, %c0_68, %c0_69], %277 {strides = array<i32>} : memref<8x2x32xf32, #tpu.memory_space<vmem>>, vector<1x2x32xf32>,
    %c8_i32 = arith.constant 8 : i32
    %c0_70 = arith.constant 0 : index
    %c0_71 = arith.constant 0 : index
    %278 = vector.load %arg4[%c0_70, %c0_71] : memref<2x32xf32, #tpu.memory_space<vmem>>, vector<2x32xf32>
    tpu.vector_store %arg4[%c0_70, %c0_71], %273 {strides = array<i32>} : memref<2x32xf32, #tpu.memory_space<vmem>>, vector<2x32xf32>,
    %c0_72 = arith.constant 0 : index
    %c0_73 = arith.constant 0 : index
    %279 = vector.load %arg5[%c0_72, %c0_73] : memref<2x32xf32, #tpu.memory_space<vmem>>, vector<2x32xf32>
    tpu.vector_store %arg5[%c0_72, %c0_73], %271 {strides = array<i32>} : memref<2x32xf32, #tpu.memory_space<vmem>>, vector<2x32xf32>,
    return
  }
  func.func @transform_0(%arg0: i32) -> (i32, i32, i32) {
    %c0_i32 = arith.constant 0 : i32
    %c0_i32_0 = arith.constant 0 : i32
    %c0_i32_1 = arith.constant 0 : i32
    return %arg0, %c0_i32, %c0_i32_0 : i32, i32, i32
  }
  func.func @transform_1(%arg0: i32) -> (i32, i32) {
    %c0_i32 = arith.constant 0 : i32
    %c0_i32_0 = arith.constant 0 : i32
    %c0_i32_1 = arith.constant 0 : i32
    return %c0_i32, %c0_i32_0 : i32, i32
  }
  func.func @transform_2(%arg0: i32) -> (i32, i32, i32) {
    %c0_i32 = arith.constant 0 : i32
    %c0_i32_0 = arith.constant 0 : i32
    %c0_i32_1 = arith.constant 0 : i32
    return %arg0, %c0_i32, %c0_i32_0 : i32, i32, i32
  }
}

</mosaic_0001>

<bundles_post_ra>
// kernel: lstm_tracker_forward.5
= control target key start
LH: loop header
LB: loop body
LE: loop exit
PB: predicated region body
PF: predicated region fallthrough
CT: control target
= control target key end

     0   :  { %vm27_vm0 = vcmask 261120   ;;  %vm109_vm1 = vcmask 23552   ;;  %s191_s1 = inlined_call_operand.vmem [shape: f32[32,3], index: 1, kind: input, shape index: {}]   ;;  %s192_s0 = inlined_call_operand.vmem [shape: f32[16,32], index: 0, kind: input, shape index: {}]   ;;  %s193_s2 = inlined_call_operand.vmem [shape: f32[1,3], index: 2, kind: input, shape index: {}]   ;;  %s194_s3 = inlined_call_operand.vmem [shape: f32[16,3], index: 3, kind: output, shape index: {}]  }
   0x1   :  { %v16_v0 = vld [vmem:[%s191_s1] sm:$0xff]  ;;  %v17_v1 = vld [vmem:[%s191_s1 + $0x8] sm:$0xff]  ;;  %v18_v2 = vld [vmem:[%s191_s1 + $0x10] sm:$0xff] }
   0x2   :  { %v136_v3 = vpack.c.bf16 %v17_v1, %v16_v0  ;;  %v19_v4 = vld [vmem:[%s191_s1 + $0x18] sm:$0xff]  ;;  %v14_v5 = vld [vmem:[%s192_s0] sm:$0xff]  ;;  %v15_v7 = vld [vmem:[%s192_s0 + $0x8] sm:$0xff] }
   0x3   :  { %v140_v6 = vpack.c.bf16 %v19_v4, %v18_v2  ;;  %133 = vmatprep.mubr.msk.f32.mxu0 %vm27_vm0, %v14_v5  ;;  %v116_v8 = vld [vmem:[%s193_s2] ss:$0 sm:$0xff] }
   0x4   :  { %137 = vmatprep.subr.bf16.mxu0 %v136_v3 }
   0x5   :  { %139 = vmatpush3.bf16.msra.mxu0 %v136_v3 }
   0x6   :  { %141 = vmatprep.subr.bf16.mxu0 %v140_v6 }
   0x9   :  { %143 = vmatpush3.bf16.msra.mxu0 %v140_v6 }
   0xc   :  { %134 = vmatmul.mubr.msk.f32.vlgmr.msra.gmra.mrb[0].mxu0 %vm27_vm0, %v15_v7 }
  0xdf   :  { %v135_v9 = vpop.f32.mrb[0].mxu0 }
  0xe0   :  { %v106_v10 = vadd.f32 %v135_v9, %v116_v8  ;;  %v100_v11 = vpop.f32.mrb[1].mxu0 }
  0xe1   :  { %v101_v12 = vadd.f32 %v116_v8, %v100_v11 }
  0xe2   :  { %111 = vst.msk [vmem:[%s194_s3 + $0x8] sm:$0xff] %vm109_vm1, %v106_v10 }
  0xe3   :  { %110 = vst.msk [vmem:[%s194_s3] sm:$0xff] %vm109_vm1, %v101_v12 }

// kernel: lstm_tracker_forward.3
= control target key start
LH: loop header
LB: loop body
LE: loop exit
PB: predicated region body
PF: predicated region fallthrough
CT: control target
= control target key end

     0   :  { %vm57_vm0 = vcmask 1043456   ;;  %vm690_vm1 = vmmov 1   ;;  %v691_v2 = vmov 0.0   ;;  %vm50_vm3 = vcmask 97280   ;;  %s1122_s1 = inlined_call_operand.vmem [shape: f32[12,150], index: 1, kind: input, shape index: {}]   ;;  %s1123_s0 = inlined_call_operand.vmem [shape: f32[16,12], index: 0, kind: input, shape index: {}]   ;;  %s1124_s3 = inlined_call_operand.vmem [shape: f32[150,200], index: 3, kind: input, shape index: {}]   ;;  %s1125_s5 = inlined_call_operand.vmem [shape: f32[200,150], index: 5, kind: input, shape index: {}]   ;;  %s1126_s2 = inlined_call_operand.vmem [shape: f32[1,150], index: 2, kind: input, shape index: {}]   ;;  %s1127_s7 = inlined_call_operand.vmem [shape: f32[150,128], index: 7, kind: input, shape index: {}]   ;;  %s1128_s4 = inlined_call_operand.vmem [shape: f32[1,200], index: 4, kind: input, shape index: {}]   ;;  %s1129_s6 = inlined_call_operand.vmem [shape: f32[1,150], index: 6, kind: input, shape index: {}]   ;;  %s1130_s8 = inlined_call_operand.vmem [shape: f32[1,128], index: 8, kind: input, shape index: {}]   ;;  %s1131_s9 = inlined_call_operand.vmem [shape: f32[16,128], index: 9, kind: output, shape index: {}]  }
   0x1   :  { %v35_v0 = vld [vmem:[%s1122_s1 + $0x8] sm:$0xff]  ;;  %v37_v1 = vld [vmem:[%s1122_s1 + $0x18] sm:$0xf]  ;;  %vm571_vm2 = vmpackc.low %vm57_vm0, %vm690_vm1  ;;  %128 = vmatprep.mubr.f32.mxu0 %v691_v2  ;;  %vm202_vm4 = vcmask 1045504   ;;  %vm195_vm5 = vcmask 179200   ;;  %vm352_vm6 = vcmask 588800  }
   0x2   :  { %v570_v3 = vpack.c.bf16 %v37_v1, %v35_v0  ;;  %v34_v4 = vld [vmem:[%s1122_s1] sm:$0xff]  ;;  %v36_v5 = vld [vmem:[%s1122_s1 + $0x10] sm:$0xf]  ;;  %v146_v8 = vld [vmem:[%s1124_s3 + $0x8] sm:$0xff] }
   0x3   :  { %v573_v6 = vpack.c.bf16 %v36_v5, %v34_v4  ;;  %v32_v7 = vld [vmem:[%s1123_s0] sm:$0xff]  ;;  %v148_v9 = vld [vmem:[%s1124_s3 + $0x18] sm:$0xff]  ;;  %v147_v12 = vld [vmem:[%s1124_s3 + $0x10] sm:$0xff] }
   0x4   :  { %572 = vmatprep.subr.msk.bf16.mxu0 %vm571_vm2, %v570_v3  ;;  %v576_v10 = vpack.c.bf16 %v148_v9, %v146_v8  ;;  %v145_v11 = vld [vmem:[%s1124_s3] sm:$0xff]  ;;  %v150_v13 = vld [vmem:[%s1124_s3 + $0x28] sm:$0xff]  ;;  %v152_v15 = vld [vmem:[%s1124_s3 + $0x38] sm:$0xff] }
   0x5   :  { %575 = vmatpush1.bf16.msk.msra.mxu0 %vm571_vm2, %v573_v6  ;;  %v578_v14 = vpack.c.bf16 %v147_v12, %v145_v11  ;;  %v149_v16 = vld [vmem:[%s1124_s3 + $0x20] sm:$0xff]  ;;  %v151_v17 = vld [vmem:[%s1124_s3 + $0x30] sm:$0xff]  ;;  %v580_v18 = vpack.c.bf16 %v152_v15, %v150_v13  ;;  %v154_v19 = vld [vmem:[%s1124_s3 + $0x48] sm:$0xff] }
   0x6   :  { %577 = vmatprep.subr.bf16.mxu1 %v576_v10  ;;  %v156_v20 = vld [vmem:[%s1124_s3 + $0x58] sm:$0xff]  ;;  %v582_v21 = vpack.c.bf16 %v151_v17, %v149_v16  ;;  %v153_v23 = vld [vmem:[%s1124_s3 + $0x40] sm:$0xff]  ;;  %v155_v24 = vld [vmem:[%s1124_s3 + $0x50] sm:$0xff] }
   0x7   :  { %579 = vmatpush1.bf16.msra.mxu1 %v578_v14  ;;  %v584_v22 = vpack.c.bf16 %v156_v20, %v154_v19  ;;  %v33_v25 = vld [vmem:[%s1123_s0 + $0x8] sm:$0xff]  ;;  %v160_v27 = vld [vmem:[%s1124_s3 + $0x78] sm:$0xff]  ;;  %v586_v28 = vpack.c.bf16 %v155_v24, %v153_v23  ;;  %v157_v30 = vld [vmem:[%s1124_s3 + $0x60] sm:$0xff] }
   0x8   :  { %558 = vmatmul.mubr.msk.f32.vlgmr.msra.gmra.mrb[0].mxu0 %vm50_vm3, %v32_v7  ;;  %581 = vmatprep.subr.bf16.mxu1 %v580_v18  ;;  %v158_v26 = vld [vmem:[%s1124_s3 + $0x68] sm:$0xff]  ;;  %v159_v31 = vld [vmem:[%s1124_s3 + $0x70] sm:$0xff]  ;;  %v164_v33 = vld [vmem:[%s1124_s3 + $0x98] sm:$0xff] }
   0x9   :  { %134 = vmatprep.mubr.f32.mxu0 %v691_v2  ;;  %v588_v29 = vpack.c.bf16 %v160_v27, %v158_v26  ;;  %v162_v32 = vld [vmem:[%s1124_s3 + $0x88] sm:$0xff]  ;;  %v590_v34 = vpack.c.bf16 %v159_v31, %v157_v30  ;;  %v161_v36 = vld [vmem:[%s1124_s3 + $0x80] sm:$0xff]  ;;  %v163_v37 = vld [vmem:[%s1124_s3 + $0x90] sm:$0xff] }
   0xa   :  { %v592_v35 = vpack.c.bf16 %v164_v33, %v162_v32  ;;  %v166_v38 = vld [vmem:[%s1124_s3 + $0xa8] sm:$0xff]  ;;  %v168_v39 = vld [vmem:[%s1124_s3 + $0xb8] sm:$0xff]  ;;  %v594_v40 = vpack.c.bf16 %v163_v37, %v161_v36  ;;  %v165_v42 = vld [vmem:[%s1124_s3 + $0xa0] sm:$0xff] }
   0xb   :  { %583 = vmatpush1.bf16.msra.mxu1 %v582_v21  ;;  %v596_v41 = vpack.c.bf16 %v168_v39, %v166_v38  ;;  %v167_v43 = vld [vmem:[%s1124_s3 + $0xb0] sm:$0xff]  ;;  %v170_v44 = vld [vmem:[%s1124_s3 + $0xc8] sm:$0xff]  ;;  %v172_v45 = vld [vmem:[%s1124_s3 + $0xd8] sm:$0xff] }
   0xc   :  { %559 = vmatmul.mubr.msk.f32.gmra.mrb[2].mxu0 %vm50_vm3, %v33_v25  ;;  %585 = vmatprep.subr.bf16.mxu1 %v584_v22  ;;  %v598_v46 = vpack.c.bf16 %v167_v43, %v165_v42  ;;  %v600_v47 = vpack.c.bf16 %v172_v45, %v170_v44  ;;  %v169_v48 = vld [vmem:[%s1124_s3 + $0xc0] sm:$0xff]  ;;  %v171_v49 = vld [vmem:[%s1124_s3 + $0xd0] sm:$0xff]  ;;  %v174_v50 = vld [vmem:[%s1124_s3 + $0xe8] sm:$0xff] }
   0xd   :  { %v176_v51 = vld [vmem:[%s1124_s3 + $0xf8] sm:$0xff]  ;;  %v602_v52 = vpack.c.bf16 %v171_v49, %v169_v48  ;;  %v173_v54 = vld [vmem:[%s1124_s3 + $0xe0] sm:$0xff]  ;;  %v175_v55 = vld [vmem:[%s1124_s3 + $0xf0] sm:$0xff] }
   0xe   :  { %v604_v53 = vpack.c.bf16 %v176_v51, %v174_v50  ;;  %v606_v56 = vpack.c.bf16 %v175_v55, %v173_v54  ;;  %v178_v57 = vld [vmem:[%s1124_s3 + $0x108] sm:$0xff]  ;;  %v180_v58 = vld [vmem:[%s1124_s3 + $0x118] sm:$0xff]  ;;  %v177_v60 = vld [vmem:[%s1124_s3 + $0x100] sm:$0xff] }
   0xf   :  { %587 = vmatpush1.bf16.msra.mxu1 %v586_v28  ;;  %v608_v59 = vpack.c.bf16 %v180_v58, %v178_v57  ;;  %v179_v61 = vld [vmem:[%s1124_s3 + $0x110] sm:$0xff]  ;;  %v182_v63 = vld [vmem:[%s1124_s3 + $0x128] sm:$0x3f]  ;;  %v181_v0 = vld [vmem:[%s1124_s3 + $0x120] sm:$0x3f] }
  0x10   :  { %589 = vmatprep.subr.bf16.mxu1 %v588_v29  ;;  %v610_v62 = vpack.c.bf16 %v179_v61, %v177_v60  ;;  %v291_v1 = vld [vmem:[%s1125_s5 + $0x8] sm:$0xff]  ;;  %v293_v3 = vld [vmem:[%s1125_s5 + $0x18] sm:$0xff]  ;;  %v290_v4 = vld [vmem:[%s1125_s5] sm:$0xff] }
  0x11   :  { %v612_v5 = vpack.c.bf16 %v293_v3, %v291_v1  ;;  %v292_v6 = vld [vmem:[%s1125_s5 + $0x10] sm:$0xff]  ;;  %v295_v7 = vld [vmem:[%s1125_s5 + $0x28] sm:$0xff]  ;;  %v297_v8 = vld [vmem:[%s1125_s5 + $0x38] sm:$0xff] }
  0x12   :  { %v614_v9 = vpack.c.bf16 %v292_v6, %v290_v4  ;;  %v616_v10 = vpack.c.bf16 %v297_v8, %v295_v7  ;;  %v294_v11 = vld [vmem:[%s1125_s5 + $0x20] sm:$0xff]  ;;  %v296_v12 = vld [vmem:[%s1125_s5 + $0x30] sm:$0xff]  ;;  %v299_v13 = vld [vmem:[%s1125_s5 + $0x48] sm:$0xff] }
  0x13   :  { %591 = vmatpush1.bf16.msra.mxu1 %v590_v34  ;;  %613 = vmatprep.subr.bf16.mxu0 %v612_v5  ;;  %v301_v14 = vld [vmem:[%s1125_s5 + $0x58] sm:$0xff]  ;;  %v618_v15 = vpack.c.bf16 %v296_v12, %v294_v11  ;;  %v298_v17 = vld [vmem:[%s1125_s5 + $0x40] sm:$0xff]  ;;  %v300_v18 = vld [vmem:[%s1125_s5 + $0x50] sm:$0xff]  ;;  %v40_v5 = vlaneseq }
  0x14   :  { %593 = vmatprep.subr.bf16.mxu1 %v592_v35  ;;  %615 = vmatpush1.bf16.msra.mxu0 %v614_v9  ;;  %v620_v16 = vpack.c.bf16 %v301_v14, %v299_v13  ;;  %v303_v19 = vld [vmem:[%s1125_s5 + $0x68] sm:$0xff]  ;;  %v305_v20 = vld [vmem:[%s1125_s5 + $0x78] sm:$0xff]  ;;  %v622_v21 = vpack.c.bf16 %v300_v18, %v298_v17  ;;  %v302_v23 = vld [vmem:[%s1125_s5 + $0x60] sm:$0xff] }
  0x15   :  { %617 = vmatprep.subr.bf16.mxu0 %v616_v10  ;;  %v624_v22 = vpack.c.bf16 %v305_v20, %v303_v19  ;;  %v304_v24 = vld [vmem:[%s1125_s5 + $0x70] sm:$0xff]  ;;  %v307_v25 = vld [vmem:[%s1125_s5 + $0x88] sm:$0xff]  ;;  %v309_v26 = vld [vmem:[%s1125_s5 + $0x98] sm:$0xff]  ;;  %v41_v6 = vshrl.u32 %v40_v5, 7 }
  0x16   :  { %v626_v27 = vpack.c.bf16 %v304_v24, %v302_v23  ;;  %v628_v28 = vpack.c.bf16 %v309_v26, %v307_v25  ;;  %v306_v29 = vld [vmem:[%s1125_s5 + $0x80] sm:$0xff]  ;;  %v308_v30 = vld [vmem:[%s1125_s5 + $0x90] sm:$0xff]  ;;  %v311_v31 = vld [vmem:[%s1125_s5 + $0xa8] sm:$0xff] }
  0x17   :  { %595 = vmatpush1.bf16.msra.mxu1 %v594_v40  ;;  %v313_v32 = vld [vmem:[%s1125_s5 + $0xb8] sm:$0xff]  ;;  %v630_v33 = vpack.c.bf16 %v308_v30, %v306_v29  ;;  %v310_v35 = vld [vmem:[%s1125_s5 + $0xa0] sm:$0xff]  ;;  %v312_v36 = vld [vmem:[%s1125_s5 + $0xb0] sm:$0xff]  ;;  %v1013_v7 = vsub.s32 0, %v41_v6  ;;  %v1018_v9 = vsub.s32 1, %v41_v6 }
  0x18   :  { %597 = vmatprep.subr.bf16.mxu1 %v596_v41  ;;  %619 = vmatpush1.bf16.msra.mxu0 %v618_v15  ;;  %v632_v34 = vpack.c.bf16 %v313_v32, %v311_v31  ;;  %v315_v37 = vld [vmem:[%s1125_s5 + $0xc8] sm:$0xff]  ;;  %v317_v38 = vld [vmem:[%s1125_s5 + $0xd8] sm:$0xff]  ;;  %v634_v39 = vpack.c.bf16 %v312_v36, %v310_v35  ;;  %v314_v41 = vld [vmem:[%s1125_s5 + $0xc0] sm:$0xff]  ;;  %v692_v32 = vmov 0.0|0.0  }
  0x19   :  { %621 = vmatprep.subr.bf16.mxu0 %v620_v16  ;;  %v636_v40 = vpack.c.bf16 %v317_v38, %v315_v37  ;;  %v316_v42 = vld [vmem:[%s1125_s5 + $0xd0] sm:$0xff]  ;;  %v319_v43 = vld [vmem:[%s1125_s5 + $0xe8] sm:$0xff]  ;;  %v321_v44 = vld [vmem:[%s1125_s5 + $0xf8] sm:$0xff] }
  0x1a   :  { %v638_v45 = vpack.c.bf16 %v316_v42, %v314_v41  ;;  %v320_v48 = vld [vmem:[%s1125_s5 + $0xf0] sm:$0xff]  ;;  %v323_v49 = vld [vmem:[%s1125_s5 + $0x108] sm:$0xff]  ;;  %v325_v50 = vld [vmem:[%s1125_s5 + $0x118] sm:$0xff] }
  0x1b   :  { %599 = vmatpush1.bf16.msra.mxu1 %v598_v46  ;;  %v640_v46 = vpack.c.bf16 %v321_v44, %v319_v43  ;;  %v324_v54 = vld [vmem:[%s1125_s5 + $0x110] sm:$0xff]  ;;  %v327_v55 = vld [vmem:[%s1125_s5 + $0x128] sm:$0xff]  ;;  %v330_v1 = vld [vmem:[%s1125_s5 + $0x140] sm:$0xff] }
  0x1c   :  { %601 = vmatprep.subr.bf16.mxu1 %v600_v47  ;;  %623 = vmatpush1.bf16.msra.mxu0 %v622_v21  ;;  %v318_v47 = vld [vmem:[%s1125_s5 + $0xe0] sm:$0xff]  ;;  %v328_v60 = vld [vmem:[%s1125_s5 + $0x130] sm:$0xff]  ;;  %v331_v61 = vld [vmem:[%s1125_s5 + $0x148] sm:$0xff] }
  0x1d   :  { %625 = vmatprep.subr.bf16.mxu0 %v624_v22  ;;  %v642_v51 = vpack.c.bf16 %v320_v48, %v318_v47  ;;  %v332_v3 = vld [vmem:[%s1125_s5 + $0x150] sm:$0xff]  ;;  %v38_v8 = vld [vmem:[%s1126_s2] sm:$0x3]  ;;  %v335_v24 = vld [vmem:[%s1125_s5 + $0x168] sm:$0xff] }
  0x1e   :  { %v654_v4 = vpack.c.bf16 %v332_v3, %v330_v1  ;;  %v43_v10 = vrot.slane %v38_v8, %v1013_v7  ;;  %v47_v11 = vrot.slane %v38_v8, %v1018_v9  ;;  %v337_v25 = vld [vmem:[%s1125_s5 + $0x178] sm:$0xff]  ;;  %v339_v30 = vld [vmem:[%s1125_s5 + $0x188] sm:$0xff]  ;;  %v338_v31 = vld [vmem:[%s1125_s5 + $0x180] sm:$0xff] }
  0x1f   :  { %603 = vmatpush1.bf16.msra.mxu1 %v602_v52  ;;  %v644_v52 = vpack.c.bf16 %v325_v50, %v323_v49  ;;  %v656_v26 = vpack.c.bf16 %v337_v25, %v335_v24  ;;  %v442_v35 = vld [vmem:[%s1127_s7 + $0x10] sm:$0xff]  ;;  %v443_v37 = vld [vmem:[%s1127_s7 + $0x18] sm:$0xff] }
  0x20   :  { %605 = vmatprep.subr.bf16.mxu1 %v604_v53  ;;  %627 = vmatpush1.bf16.msra.mxu0 %v626_v27  ;;  %v322_v53 = vld [vmem:[%s1125_s5 + $0x100] sm:$0xff]  ;;  %v664_v38 = vpack.c.bf16 %v443_v37, %v442_v35  ;;  %v446_v42 = vld [vmem:[%s1127_s7 + $0x30] sm:$0xff]  ;;  %v447_v43 = vld [vmem:[%s1127_s7 + $0x38] sm:$0xff] }
  0x21   :  { %629 = vmatprep.subr.bf16.mxu0 %v628_v28  ;;  %v646_v57 = vpack.c.bf16 %v324_v54, %v322_v53  ;;  %v334_v27 = vld [vmem:[%s1125_s5 + $0x160] sm:$0xff]  ;;  %v336_v28 = vld [vmem:[%s1125_s5 + $0x170] sm:$0xff]  ;;  %v670_v44 = vpack.c.bf16 %v447_v43, %v446_v42  ;;  %v451_v49 = vld [vmem:[%s1127_s7 + $0x58] sm:$0xff] }
  0x22   :  { %v658_v29 = vpack.c.bf16 %v336_v28, %v334_v27  ;;  %v450_v48 = vld [vmem:[%s1127_s7 + $0x50] sm:$0xff] }
  0x23   :  { %607 = vmatpush1.bf16.msra.mxu1 %v606_v56  ;;  %v329_v56 = vld [vmem:[%s1125_s5 + $0x138] sm:$0xff]  ;;  %v676_v50 = vpack.c.bf16 %v451_v49, %v450_v48  ;;  %v454_v54 = vld [vmem:[%s1127_s7 + $0x70] sm:$0xff] }
  0x24   :  { %609 = vmatprep.subr.bf16.mxu1 %v608_v59  ;;  %631 = vmatpush1.bf16.msra.mxu0 %v630_v33  ;;  %v648_v58 = vpack.c.bf16 %v329_v56, %v327_v55  ;;  %v326_v59 = vld [vmem:[%s1125_s5 + $0x120] sm:$0xff]  ;;  %v455_v55 = vld [vmem:[%s1127_s7 + $0x78] sm:$0xff] }
  0x25   :  { %633 = vmatprep.subr.bf16.mxu0 %v632_v34  ;;  %v440_v33 = vld [vmem:[%s1127_s7] sm:$0xff]  ;;  %v441_v34 = vld [vmem:[%s1127_s7 + $0x8] sm:$0xff]  ;;  %v682_v56 = vpack.c.bf16 %v455_v55, %v454_v54 }
  0x26   :  { %v661_v36 = vpack.c.bf16 %v441_v34, %v440_v33 }
  0x27   :  { %611 = vmatpush1.bf16.msra.mxu1 %v610_v62  ;;  %v333_v62 = vld [vmem:[%s1125_s5 + $0x158] sm:$0xff] }
  0x28   :  { %560 = vmatprep.subr.msk.mxu1 %vm202_vm4, %v182_v63  ;;  %635 = vmatpush1.bf16.msra.mxu0 %v634_v39  ;;  %v650_v63 = vpack.c.bf16 %v328_v60, %v326_v59  ;;  %v444_v39 = vld [vmem:[%s1127_s7 + $0x20] sm:$0xff] }
  0x29   :  { %637 = vmatprep.subr.bf16.mxu0 %v636_v40  ;;  %v445_v40 = vld [vmem:[%s1127_s7 + $0x28] sm:$0xff] }
  0x2a   :  { %v667_v41 = vpack.c.bf16 %v445_v40, %v444_v39 }
  0x2b   :  { %561 = vmatpush1.msk.msra.mxu1 %vm202_vm4, %v181_v0  ;;  %v652_v0 = vpack.c.bf16 %v333_v62, %v331_v61 }
  0x2c   :  { %639 = vmatpush1.bf16.msra.mxu0 %v638_v45  ;;  %660 = vmatprep.subr.bf16.mxu1 %v692_v32  ;;  %v448_v45 = vld [vmem:[%s1127_s7 + $0x40] sm:$0xff] }
  0x2d   :  { %641 = vmatprep.subr.bf16.mxu0 %v640_v46  ;;  %v449_v46 = vld [vmem:[%s1127_s7 + $0x48] sm:$0xff] }
  0x2e   :  { %v673_v47 = vpack.c.bf16 %v449_v46, %v448_v45 }
  0x30   :  { %643 = vmatpush1.bf16.msra.mxu0 %v642_v51  ;;  %v452_v51 = vld [vmem:[%s1127_s7 + $0x60] sm:$0xff] }
  0x31   :  { %645 = vmatprep.subr.bf16.mxu0 %v644_v52  ;;  %v453_v52 = vld [vmem:[%s1127_s7 + $0x68] sm:$0xff] }
  0x32   :  { %v679_v53 = vpack.c.bf16 %v453_v52, %v452_v51 }
  0x34   :  { %647 = vmatpush1.bf16.msra.mxu0 %v646_v57  ;;  %v183_v57 = vld [vmem:[%s1128_s4] sm:$0x3] }
  0x35   :  { %649 = vmatprep.subr.bf16.mxu0 %v648_v58  ;;  %v188_v58 = vrot.slane %v183_v57, %v1013_v7  ;;  %v192_v59 = vrot.slane %v183_v57, %v1018_v9 }
  0x38   :  { %651 = vmatpush1.bf16.msra.mxu0 %v650_v63 }
  0x39   :  { %653 = vmatprep.subr.bf16.mxu0 %v652_v0 }
  0x3c   :  { %655 = vmatpush1.bf16.msra.mxu0 %v654_v4 }
  0x3d   :  { %657 = vmatprep.subr.bf16.mxu0 %v656_v26 }
  0x40   :  { %659 = vmatpush1.bf16.msra.mxu0 %v658_v29 }
  0x41   :  { %407 = vmatprep.subr.mxu0 %v339_v30 }
  0x44   :  { %408 = vmatpush1.msra.mxu0 %v338_v31 }
  0xdb   :  { %v130_v12 = vpop.f32.mrb[0].mxu0 }
  0xdc   :  { %v131_v13 = vadd.f32 %v130_v12, %v43_v10  ;;  %v132_v14 = vpop.f32.mrb[1].mxu0  ;;  %v457_v12 = vld [vmem:[%s1127_s7 + $0x88] sm:$0xff] }
  0xdd   :  { %v133_v15 = vadd.f32 %v132_v14, %v47_v11  ;;  %v458_v14 = vld [vmem:[%s1127_s7 + $0x90] sm:$0x3f] }
  0xde   :  { %v141_v18 = vmax.f32 %v131_v13, 0.0 }
  0xdf   :  { %v142_v16 = vmax.f32 %v133_v15, 0.0  ;;  %v136_v17 = vpop.f32.mrb[2].mxu0  ;;  %v340_v15 = vld [vmem:[%s1129_s6] sm:$0x3] }
  0xe0   :  { %v137_v19 = vadd.f32 %v136_v17, %v43_v10  ;;  %v138_v20 = vpop.f32.mrb[3].mxu0  ;;  %v349_v17 = vrot.slane %v340_v15, %v1018_v9 }
  0xe1   :  { %v139_v21 = vadd.f32 %v138_v20, %v47_v11  ;;  %562 = vmatprep.mubr.msk.f32.mxu1 %vm195_vm5, %v142_v16  ;;  %v456_v11 = vld [vmem:[%s1127_s7 + $0x80] sm:$0xff]  ;;  %v345_v16 = vrot.slane %v340_v15, %v1013_v7 }
  0xe2   :  { %274 = vmatmul.mubr.f32.vlgmr.msra.gmra.mrb[0].mxu1 %v141_v18  ;;  %v143_v23 = vmax.f32 %v137_v19, 0.0  ;;  %v685_v13 = vpack.c.bf16 %v457_v12, %v456_v11  ;;  %v566_v7 = vld [vmem:[%s1130_s8] ss:$0 sm:$0xff] }
  0xe3   :  { %v144_v22 = vmax.f32 %v139_v21, 0.0  ;;  %662 = vmatpush1.bf16.msra.mxu1 %v661_v36 }
  0xe4   :  { %663 = vmatprep.subr.bf16.mxu1 %v692_v32 }
  0xe5   :  { %563 = vmatprep.mubr.msk.f32.mxu1 %vm195_vm5, %v144_v22 }
  0xe6   :  { %280 = vmatmul.mubr.f32.gmra.mrb[2].mxu1 %v143_v23 }
  0xe7   :  { %665 = vmatpush1.bf16.msra.mxu1 %v664_v38 }
  0xe8   :  { %666 = vmatprep.subr.bf16.mxu1 %v692_v32 }
  0xeb   :  { %668 = vmatpush1.bf16.msra.mxu1 %v667_v41 }
  0xec   :  { %669 = vmatprep.subr.bf16.mxu1 %v692_v32 }
  0xef   :  { %671 = vmatpush1.bf16.msra.mxu1 %v670_v44 }
  0xf0   :  { %672 = vmatprep.subr.bf16.mxu1 %v692_v32 }
  0xf3   :  { %674 = vmatpush1.bf16.msra.mxu1 %v673_v47 }
  0xf4   :  { %675 = vmatprep.subr.bf16.mxu1 %v692_v32 }
  0xf7   :  { %677 = vmatpush1.bf16.msra.mxu1 %v676_v50 }
  0xf8   :  { %678 = vmatprep.subr.bf16.mxu1 %v692_v32 }
  0xfb   :  { %680 = vmatpush1.bf16.msra.mxu1 %v679_v53 }
  0xfc   :  { %681 = vmatprep.subr.bf16.mxu1 %v692_v32 }
  0xff   :  { %683 = vmatpush1.bf16.msra.mxu1 %v682_v56 }
 0x100   :  { %684 = vmatprep.subr.bf16.mxu1 %v692_v32 }
 0x103   :  { %686 = vmatpush1.bf16.msra.mxu1 %v685_v13 }
 0x104   :  { %511 = vmatprep.subr.mxu1 %v691_v2 }
 0x107   :  { %567 = vmatpush1.msk.msra.mxu1 %vm202_vm4, %v458_v14 }
 0x1b5   :  { %v275_v60 = vpop.f32.mrb[0].mxu1 }
 0x1b6   :  { %v276_v61 = vadd.f32 %v275_v60, %v188_v58  ;;  %v277_v62 = vpop.f32.mrb[1].mxu1 }
 0x1b7   :  { %v278_v63 = vadd.f32 %v277_v62, %v192_v59 }
 0x1b8   :  { %v286_v3 = vmax.f32 %v276_v61, 0.0 }
 0x1b9   :  { %v287_v0 = vmax.f32 %v278_v63, 0.0  ;;  %v281_v1 = vpop.f32.mrb[2].mxu1 }
 0x1ba   :  { %v282_v4 = vadd.f32 %v281_v1, %v188_v58  ;;  %v283_v5 = vpop.f32.mrb[3].mxu1 }
 0x1bb   :  { %v284_v6 = vadd.f32 %v283_v5, %v192_v59  ;;  %564 = vmatprep.mubr.msk.f32.mxu0 %vm352_vm6, %v287_v0 }
 0x1bc   :  { %424 = vmatmul.mubr.f32.vlgmr.msra.gmra.mrb[4].mxu0 %v286_v3  ;;  %v288_v10 = vmax.f32 %v282_v4, 0.0 }
 0x1bd   :  { %v289_v8 = vmax.f32 %v284_v6, 0.0 }
 0x1bf   :  { %565 = vmatprep.mubr.msk.f32.mxu0 %vm352_vm6, %v289_v8 }
 0x1c0   :  { %430 = vmatmul.mubr.f32.gmra.mrb[6].mxu0 %v288_v10 }
 0x28f   :  { %v425_v18 = vpop.f32.mrb[4].mxu0 }
 0x290   :  { %v426_v19 = vadd.f32 %v425_v18, %v345_v16  ;;  %v427_v20 = vpop.f32.mrb[5].mxu0 }
 0x291   :  { %v428_v21 = vadd.f32 %v427_v20, %v349_v17 }
 0x292   :  { %v436_v23 = vmax.f32 %v426_v19, 0.0 }
 0x293   :  { %v437_v22 = vmax.f32 %v428_v21, 0.0  ;;  %v431_v2 = vpop.f32.mrb[6].mxu0 }
 0x294   :  { %v432_v24 = vadd.f32 %v431_v2, %v345_v16  ;;  %v433_v25 = vpop.f32.mrb[7].mxu0 }
 0x295   :  { %v434_v26 = vadd.f32 %v433_v25, %v349_v17  ;;  %568 = vmatprep.mubr.msk.f32.mxu1 %vm195_vm5, %v437_v22 }
 0x296   :  { %540 = vmatmul.mubr.f32.vlgmr.msra.gmra.mrb[4].mxu1 %v436_v23  ;;  %v438_v28 = vmax.f32 %v432_v24, 0.0 }
 0x297   :  { %v439_v27 = vmax.f32 %v434_v26, 0.0 }
 0x299   :  { %569 = vmatprep.mubr.msk.f32.mxu1 %vm195_vm5, %v439_v27 }
 0x29a   :  { %545 = vmatmul.mubr.f32.gmra.mrb[6].mxu1 %v438_v28 }
 0x369   :  { %v541_v9 = vpop.f32.mrb[4].mxu1 }
 0x36a   :  { %v542_v29 = vadd.f32 %v566_v7, %v541_v9  ;;  %v543_v30 = vpop.f32.mrb[5].mxu1 }
 0x36c   :  { %550 = vst [vmem:[%s1131_s9] sm:$0xff] %v542_v29 }
 0x36d   :  { %v546_v31 = vpop.f32.mrb[6].mxu1 }
 0x36e   :  { %v547_v32 = vadd.f32 %v566_v7, %v546_v31  ;;  %v548_v33 = vpop.f32.mrb[7].mxu1 }
 0x370   :  { %551 = vst [vmem:[%s1131_s9 + $0x8] sm:$0xff] %v547_v32 }

// kernel: lstm_tracker_forward.4
= control target key start
LH: loop header
LB: loop body
LE: loop exit
PB: predicated region body
PF: predicated region fallthrough
CT: control target
= control target key end

     0   :  { %vm15_vm0 = vcmask 254976   ;;  %v1155_v0 = vmov 0.0|0.0   ;;  %vm1156_vm1 = vmmov 0   ;;  %v1157_v4 = vmov 0.0   ;;  %s1158_s18 = smov 64   ;;  %s1159_s19 = smov 32   ;;  %s1343_s1 = inlined_call_operand.vmem [shape: f32[32,128], index: 1, kind: input, shape index: {}]   ;;  %s1344_s0 = inlined_call_operand.vmem [shape: f32[8,2,128], index: 0, kind: input, shape index: {}]   ;;  %s1345_s2 = inlined_call_operand.vmem [shape: f32[8,2,32], index: 2, kind: output, shape index: {}]  }
   0x1   :  { %1037 = vmatprep.subr.bf16.mxu0 %v1155_v0  ;;  %v18_v1 = vld [vmem:[%s1343_s1] sm:$0xff]  ;;  %v19_v2 = vld [vmem:[%s1343_s1 + $0x8] sm:$0xff]  ;;  %v20_v3 = vld [vmem:[%s1343_s1 + $0x10] sm:$0xff]  ;;  %957 = vmatprep.mubr.msk.f32.mxu0 %vm1156_vm1, %v1157_v4  ;;  %16 = vst.msk [vmem:[#allocation2] sm:$0x3] %vm15_vm0, %v1157_v4  ;;  %vm25_vm2 = vcmask 261120  }
   0x2   :  { %17 = vst.msk [vmem:[#allocation3] sm:$0x3] %vm15_vm0, %v1157_v4  ;;  %v1192_v5 = vpack.c.bf16 %v19_v2, %v18_v1  ;;  %v21_v6 = vld [vmem:[%s1343_s1 + $0x18] sm:$0xff]  ;;  %1043 = vmatprep.subr.bf16.mxu1 %v1155_v0  ;;  %968 = vmatprep.mubr.msk.f32.mxu1 %vm1156_vm1, %v1157_v4  ;;  %v24_v9 = vld [vmem:[%s1344_s0] sm:$0x3] }
   0x3   :  { %v1201_v7 = vpack.c.bf16 %v21_v6, %v20_v3  ;;  %v881_v29 = vld [vmem:[%s1344_s0 + $0x2] sm:$0x3]  ;;  %v885_v47 = vld [vmem:[%s1344_s0 + $0x4] sm:$0x3]  ;;  %v889_v2 = vld [vmem:[%s1344_s0 + $0x6] sm:$0x3] }
   0x4   :  { %1039 = vmatpush3.bf16.msra.mxu0 %v1192_v5  ;;  %1045 = vmatpush3.bf16.msra.mxu1 %v1192_v5 }
   0x5   :  { %1040 = vmatprep.subr.bf16.mxu0 %v1155_v0  ;;  %1046 = vmatprep.subr.bf16.mxu1 %v1155_v0 }
   0x8   :  { %1042 = vmatpush3.bf16.msra.mxu0 %v1201_v7  ;;  %v22_v8 = vld [vmem:[#allocation2] sm:$0x3]  ;;  %1048 = vmatpush3.bf16.msra.mxu1 %v1201_v7 }
   0x9   :  { %1049 = vmatprep.subr.bf16.mxu0 %v1155_v0  ;;  %1055 = vmatprep.subr.bf16.mxu1 %v1155_v0  ;;  %v23_v14 = vld [vmem:[#allocation3] sm:$0x3] }
   0xb   :  { %958 = vmatmul.mubr.msk.f32.vlgmr.msra.gmra.mrb[0].mxu0 %vm25_vm2, %v22_v8 }
   0xc   :  { %1051 = vmatpush3.bf16.msra.mxu0 %v1192_v5  ;;  %979 = vmatprep.mubr.msk.f32.mxu0 %vm1156_vm1, %v1157_v4 }
   0xd   :  { %1052 = vmatprep.subr.bf16.mxu0 %v1155_v0 }
  0x10   :  { %1054 = vmatpush3.bf16.msra.mxu0 %v1201_v7 }
  0x11   :  { %1061 = vmatprep.subr.bf16.mxu0 %v1155_v0 }
  0xde   :  { %v95_v10 = vpop.f32.mrb[0].mxu0 }
  0xdf   :  { %v99_v11 = vadd.f32 %v95_v10, %v24_v9  ;;  %v959_v12 = vpop.f32.mrb[1].mxu0 }
  0xe1   :  { %1091 = vtanh.f32 %v99_v11  ;;  %v880_v15 = vmul.f32 -1.442695, %v99_v11 }
  0xe3   :  { %1093 = vpow2.f32 %v880_v15 }
  0xeb   :  { %v1092_v13 = vpop.eup %1091 }
  0xec   :  { %113 = vrot.lane.b32.xlu0 %v1092_v13, %s1158_s18 }
  0xed   :  { %v1094_v16 = vpop.eup %1093 }
  0xee   :  { %v103_v17 = vadd.f32 1.0, %v1094_v16 }
  0xf0   :  { %108 = vrot.lane.b32.xlu0 %v23_v14, %s1159_s19  ;;  %1095 = vrcp.f32 %v103_v17 }
  0xfa   :  { %v1096_v18 = vpop.eup %1095 }
 0x15e   :  { %v114_v19 = vpop.permute.xlu0 %113 }
 0x15f   :  { %v116_v20 = vmul.f32 %v1096_v18, %v114_v19 }
 0x161   :  { %118 = vrot.lane.b32.xlu1 %v116_v20, %s1159_s19 }
 0x162   :  { %v109_v21 = vpop.permute.xlu0 %108 }
 0x163   :  { %v111_v22 = vmul.f32 %v1096_v18, %v109_v21 }
 0x1d3   :  { %v119_v23 = vpop.permute.xlu1 %118 }
 0x1d4   :  { %v121_v24 = vadd.f32 %v119_v23, %v111_v22  ;;  %v893_v23 = vld [vmem:[%s1344_s0 + $0x8] sm:$0x3] }
 0x1d6   :  { %1097 = vtanh.f32 %v121_v24 }
 0x1e0   :  { %v1098_v25 = vpop.eup %1097 }
 0x1e1   :  { %124 = vrot.lane.b32.xlu1 %v1098_v25, %s1158_s18 }
 0x253   :  { %v125_v26 = vpop.permute.xlu1 %124 }
 0x254   :  { %v127_v27 = vmul.f32 %v1096_v18, %v125_v26 }
 0x256   :  { %129 = vrot.lane.b32.xlu0 %v127_v27, %s1159_s19 }
 0x2c8   :  { %v130_v28 = vpop.permute.xlu0 %129 }
 0x2c9   :  { %133 = vst.msk [vmem:[%s1345_s2] sm:$0x3] %vm15_vm0, %v130_v28  ;;  %969 = vmatmul.mubr.msk.f32.vlgmr.msra.gmra.mrb[0].mxu1 %vm25_vm2, %v130_v28 }
 0x2ca   :  { %1057 = vmatpush3.bf16.msra.mxu1 %v1192_v5  ;;  %990 = vmatprep.mubr.msk.f32.mxu1 %vm1156_vm1, %v1157_v4 }
 0x2cb   :  { %1058 = vmatprep.subr.bf16.mxu1 %v1155_v0 }
 0x2ce   :  { %1060 = vmatpush3.bf16.msra.mxu1 %v1201_v7 }
 0x2cf   :  { %1067 = vmatprep.subr.bf16.mxu1 %v1155_v0 }
 0x39c   :  { %v204_v30 = vpop.f32.mrb[0].mxu1 }
 0x39d   :  { %v208_v31 = vadd.f32 %v881_v29, %v204_v30  ;;  %v970_v32 = vpop.f32.mrb[1].mxu1 }
 0x39f   :  { %1099 = vtanh.f32 %v208_v31  ;;  %v883_v34 = vmul.f32 -1.442695, %v208_v31 }
 0x3a1   :  { %1101 = vpow2.f32 %v883_v34 }
 0x3a9   :  { %v1100_v33 = vpop.eup %1099 }
 0x3aa   :  { %218 = vrot.lane.b32.xlu1 %v1100_v33, %s1158_s18 }
 0x3ab   :  { %v1102_v35 = vpop.eup %1101 }
 0x3ac   :  { %v212_v36 = vadd.f32 1.0, %v1102_v35 }
 0x3ae   :  { %1103 = vrcp.f32 %v212_v36 }
 0x3b8   :  { %v1104_v37 = vpop.eup %1103 }
 0x3b9   :  { %v216_v40 = vmul.f32 %v1104_v37, %v121_v24 }
 0x41c   :  { %v219_v38 = vpop.permute.xlu1 %218 }
 0x41d   :  { %v221_v39 = vmul.f32 %v1104_v37, %v219_v38 }
 0x41f   :  { %223 = vrot.lane.b32.xlu0 %v221_v39, %s1159_s19 }
 0x491   :  { %v224_v41 = vpop.permute.xlu0 %223 }
 0x492   :  { %v226_v42 = vadd.f32 %v224_v41, %v216_v40  ;;  %v897_v41 = vld [vmem:[%s1344_s0 + $0xa] sm:$0x3] }
 0x494   :  { %1105 = vtanh.f32 %v226_v42 }
 0x49e   :  { %v1106_v43 = vpop.eup %1105 }
 0x49f   :  { %229 = vrot.lane.b32.xlu1 %v1106_v43, %s1158_s18 }
 0x511   :  { %v230_v44 = vpop.permute.xlu1 %229 }
 0x512   :  { %v232_v45 = vmul.f32 %v1104_v37, %v230_v44 }
 0x514   :  { %234 = vrot.lane.b32.xlu0 %v232_v45, %s1159_s19 }
 0x586   :  { %v235_v46 = vpop.permute.xlu0 %234 }
 0x587   :  { %884 = vst.msk [vmem:[%s1345_s2 + $0x2] sm:$0x3] %vm15_vm0, %v235_v46  ;;  %980 = vmatmul.mubr.msk.f32.vlgmr.msra.gmra.mrb[2].mxu0 %vm25_vm2, %v235_v46 }
 0x588   :  { %1063 = vmatpush3.bf16.msra.mxu0 %v1192_v5  ;;  %1001 = vmatprep.mubr.msk.f32.mxu0 %vm1156_vm1, %v1157_v4 }
 0x589   :  { %1064 = vmatprep.subr.bf16.mxu0 %v1155_v0 }
 0x58c   :  { %1066 = vmatpush3.bf16.msra.mxu0 %v1201_v7 }
 0x58d   :  { %1073 = vmatprep.subr.bf16.mxu0 %v1155_v0 }
 0x65a   :  { %v309_v48 = vpop.f32.mrb[2].mxu0 }
 0x65b   :  { %v313_v49 = vadd.f32 %v885_v47, %v309_v48  ;;  %v981_v50 = vpop.f32.mrb[3].mxu0 }
 0x65d   :  { %1107 = vtanh.f32 %v313_v49  ;;  %v887_v52 = vmul.f32 -1.442695, %v313_v49 }
 0x65f   :  { %1109 = vpow2.f32 %v887_v52 }
 0x667   :  { %v1108_v51 = vpop.eup %1107 }
 0x668   :  { %323 = vrot.lane.b32.xlu1 %v1108_v51, %s1158_s18 }
 0x669   :  { %v1110_v53 = vpop.eup %1109 }
 0x66a   :  { %v317_v54 = vadd.f32 1.0, %v1110_v53 }
 0x66c   :  { %1111 = vrcp.f32 %v317_v54 }
 0x676   :  { %v1112_v55 = vpop.eup %1111 }
 0x677   :  { %v321_v58 = vmul.f32 %v1112_v55, %v226_v42 }
 0x6da   :  { %v324_v56 = vpop.permute.xlu1 %323 }
 0x6db   :  { %v326_v57 = vmul.f32 %v1112_v55, %v324_v56 }
 0x6dd   :  { %328 = vrot.lane.b32.xlu0 %v326_v57, %s1159_s19 }
 0x74f   :  { %v329_v59 = vpop.permute.xlu0 %328 }
 0x750   :  { %v331_v60 = vadd.f32 %v329_v59, %v321_v58 }
 0x752   :  { %1113 = vtanh.f32 %v331_v60 }
 0x75c   :  { %v1114_v61 = vpop.eup %1113 }
 0x75d   :  { %334 = vrot.lane.b32.xlu1 %v1114_v61, %s1158_s18 }
 0x7cf   :  { %v335_v62 = vpop.permute.xlu1 %334 }
 0x7d0   :  { %v337_v63 = vmul.f32 %v1112_v55, %v335_v62  ;;  %v901_v55 = vld [vmem:[%s1344_s0 + $0xc] sm:$0x3] }
 0x7d2   :  { %339 = vrot.lane.b32.xlu0 %v337_v63, %s1159_s19 }
 0x844   :  { %v340_v1 = vpop.permute.xlu0 %339 }
 0x845   :  { %888 = vst.msk [vmem:[%s1345_s2 + $0x4] sm:$0x3] %vm15_vm0, %v340_v1  ;;  %991 = vmatmul.mubr.msk.f32.vlgmr.msra.gmra.mrb[2].mxu1 %vm25_vm2, %v340_v1 }
 0x846   :  { %1069 = vmatpush3.bf16.msra.mxu1 %v1192_v5  ;;  %1012 = vmatprep.mubr.msk.f32.mxu1 %vm1156_vm1, %v1157_v4 }
 0x847   :  { %1070 = vmatprep.subr.bf16.mxu1 %v1155_v0 }
 0x84a   :  { %1072 = vmatpush3.bf16.msra.mxu1 %v1201_v7 }
 0x84b   :  { %1079 = vmatprep.subr.bf16.mxu1 %v1155_v0 }
 0x918   :  { %v414_v3 = vpop.f32.mrb[2].mxu1 }
 0x919   :  { %v418_v6 = vadd.f32 %v889_v2, %v414_v3  ;;  %v992_v8 = vpop.f32.mrb[3].mxu1 }
 0x91b   :  { %1115 = vtanh.f32 %v418_v6  ;;  %v891_v10 = vmul.f32 -1.442695, %v418_v6 }
 0x91d   :  { %1117 = vpow2.f32 %v891_v10 }
 0x925   :  { %v1116_v9 = vpop.eup %1115 }
 0x926   :  { %428 = vrot.lane.b32.xlu1 %v1116_v9, %s1158_s18 }
 0x927   :  { %v1118_v11 = vpop.eup %1117 }
 0x928   :  { %v422_v12 = vadd.f32 1.0, %v1118_v11 }
 0x92a   :  { %1119 = vrcp.f32 %v422_v12 }
 0x934   :  { %v1120_v13 = vpop.eup %1119 }
 0x935   :  { %v426_v16 = vmul.f32 %v1120_v13, %v331_v60 }
 0x998   :  { %v429_v14 = vpop.permute.xlu1 %428 }
 0x999   :  { %v431_v15 = vmul.f32 %v1120_v13, %v429_v14 }
 0x99b   :  { %433 = vrot.lane.b32.xlu0 %v431_v15, %s1159_s19 }
 0xa0d   :  { %v434_v17 = vpop.permute.xlu0 %433 }
 0xa0e   :  { %v436_v18 = vadd.f32 %v434_v17, %v426_v16 }
 0xa10   :  { %1121 = vtanh.f32 %v436_v18 }
 0xa1a   :  { %v1122_v19 = vpop.eup %1121 }
 0xa1b   :  { %439 = vrot.lane.b32.xlu1 %v1122_v19, %s1158_s18 }
 0xa8d   :  { %v440_v20 = vpop.permute.xlu1 %439 }
 0xa8e   :  { %v442_v21 = vmul.f32 %v1120_v13, %v440_v20  ;;  %v905_v13 = vld [vmem:[%s1344_s0 + $0xe] sm:$0x3]  ;;  %s1160_s0 = smov 96  }
 0xa90   :  { %444 = vrot.lane.b32.xlu0 %v442_v21, %s1159_s19 }
 0xb02   :  { %v445_v22 = vpop.permute.xlu0 %444 }
 0xb03   :  { %892 = vst.msk [vmem:[%s1345_s2 + $0x6] sm:$0x3] %vm15_vm0, %v445_v22  ;;  %1002 = vmatmul.mubr.msk.f32.vlgmr.msra.gmra.mrb[4].mxu0 %vm25_vm2, %v445_v22 }
 0xb04   :  { %1075 = vmatpush3.bf16.msra.mxu0 %v1192_v5  ;;  %1023 = vmatprep.mubr.msk.f32.mxu0 %vm1156_vm1, %v1157_v4 }
 0xb05   :  { %1076 = vmatprep.subr.bf16.mxu0 %v1155_v0 }
 0xb08   :  { %1078 = vmatpush3.bf16.msra.mxu0 %v1201_v7 }
 0xbd6   :  { %v519_v24 = vpop.f32.mrb[4].mxu0 }
 0xbd7   :  { %v523_v25 = vadd.f32 %v893_v23, %v519_v24  ;;  %v1003_v26 = vpop.f32.mrb[5].mxu0 }
 0xbd9   :  { %1123 = vtanh.f32 %v523_v25  ;;  %v895_v28 = vmul.f32 -1.442695, %v523_v25 }
 0xbdb   :  { %1125 = vpow2.f32 %v895_v28 }
 0xbe3   :  { %v1124_v27 = vpop.eup %1123 }
 0xbe4   :  { %533 = vrot.lane.b32.xlu1 %v1124_v27, %s1158_s18 }
 0xbe5   :  { %v1126_v29 = vpop.eup %1125 }
 0xbe6   :  { %v527_v30 = vadd.f32 1.0, %v1126_v29 }
 0xbe8   :  { %1127 = vrcp.f32 %v527_v30 }
 0xbf2   :  { %v1128_v31 = vpop.eup %1127 }
 0xbf3   :  { %v531_v34 = vmul.f32 %v1128_v31, %v436_v18 }
 0xc56   :  { %v534_v32 = vpop.permute.xlu1 %533 }
 0xc57   :  { %v536_v33 = vmul.f32 %v1128_v31, %v534_v32 }
 0xc59   :  { %538 = vrot.lane.b32.xlu0 %v536_v33, %s1159_s19 }
 0xccb   :  { %v539_v35 = vpop.permute.xlu0 %538 }
 0xccc   :  { %v541_v36 = vadd.f32 %v539_v35, %v531_v34 }
 0xcce   :  { %1129 = vtanh.f32 %v541_v36 }
 0xcd8   :  { %v1130_v37 = vpop.eup %1129 }
 0xcd9   :  { %544 = vrot.lane.b32.xlu1 %v1130_v37, %s1158_s18 }
 0xd4b   :  { %v545_v38 = vpop.permute.xlu1 %544 }
 0xd4c   :  { %v547_v39 = vmul.f32 %v1128_v31, %v545_v38 }
 0xd4e   :  { %549 = vrot.lane.b32.xlu0 %v547_v39, %s1159_s19 }
 0xdc0   :  { %v550_v40 = vpop.permute.xlu0 %549 }
 0xdc1   :  { %896 = vst.msk [vmem:[%s1345_s2 + $0x8] sm:$0x3] %vm15_vm0, %v550_v40  ;;  %1013 = vmatmul.mubr.msk.f32.vlgmr.msra.gmra.mrb[4].mxu1 %vm25_vm2, %v550_v40 }
 0xdc2   :  { %1081 = vmatpush3.bf16.msra.mxu1 %v1192_v5  ;;  %1034 = vmatprep.mubr.msk.f32.mxu1 %vm1156_vm1, %v1157_v4 }
 0xdc3   :  { %1082 = vmatprep.subr.bf16.mxu1 %v1155_v0 }
 0xdc6   :  { %1084 = vmatpush3.bf16.msra.mxu1 %v1201_v7 }
 0xe94   :  { %v624_v42 = vpop.f32.mrb[4].mxu1 }
 0xe95   :  { %v628_v43 = vadd.f32 %v897_v41, %v624_v42  ;;  %v1014_v44 = vpop.f32.mrb[5].mxu1 }
 0xe97   :  { %1131 = vtanh.f32 %v628_v43  ;;  %v899_v46 = vmul.f32 -1.442695, %v628_v43 }
 0xe99   :  { %1133 = vpow2.f32 %v899_v46 }
 0xea1   :  { %v1132_v45 = vpop.eup %1131 }
 0xea2   :  { %638 = vrot.lane.b32.xlu1 %v1132_v45, %s1158_s18 }
 0xea3   :  { %v1134_v5 = vpop.eup %1133 }
 0xea4   :  { %v632_v47 = vadd.f32 1.0, %v1134_v5 }
 0xea6   :  { %1135 = vrcp.f32 %v632_v47 }
 0xeb0   :  { %v1136_v4 = vpop.eup %1135 }
 0xeb1   :  { %v636_v7 = vmul.f32 %v1136_v4, %v541_v36 }
 0xf14   :  { %v639_v0 = vpop.permute.xlu1 %638 }
 0xf15   :  { %v641_v48 = vmul.f32 %v1136_v4, %v639_v0 }
 0xf17   :  { %643 = vrot.lane.b32.xlu0 %v641_v48, %s1159_s19 }
 0xf89   :  { %v644_v49 = vpop.permute.xlu0 %643 }
 0xf8a   :  { %v646_v50 = vadd.f32 %v644_v49, %v636_v7 }
 0xf8c   :  { %1137 = vtanh.f32 %v646_v50 }
 0xf96   :  { %v1138_v51 = vpop.eup %1137 }
 0xf97   :  { %649 = vrot.lane.b32.xlu1 %v1138_v51, %s1158_s18 }
0x1009   :  { %v650_v52 = vpop.permute.xlu1 %649 }
0x100a   :  { %v652_v53 = vmul.f32 %v1136_v4, %v650_v52 }
0x100c   :  { %654 = vrot.lane.b32.xlu0 %v652_v53, %s1159_s19 }
0x107e   :  { %v655_v54 = vpop.permute.xlu0 %654 }
0x107f   :  { %900 = vst.msk [vmem:[%s1345_s2 + $0xa] sm:$0x3] %vm15_vm0, %v655_v54  ;;  %1024 = vmatmul.mubr.msk.f32.vlgmr.msra.gmra.mrb[6].mxu0 %vm25_vm2, %v655_v54 }
0x1152   :  { %v729_v56 = vpop.f32.mrb[6].mxu0 }
0x1153   :  { %v733_v57 = vadd.f32 %v901_v55, %v729_v56  ;;  %v1025_v58 = vpop.f32.mrb[7].mxu0 }
0x1155   :  { %1139 = vtanh.f32 %v733_v57  ;;  %v903_v60 = vmul.f32 -1.442695, %v733_v57 }
0x1157   :  { %1141 = vpow2.f32 %v903_v60 }
0x115f   :  { %v1140_v59 = vpop.eup %1139 }
0x1160   :  { %743 = vrot.lane.b32.xlu1 %v1140_v59, %s1158_s18 }
0x1161   :  { %v1142_v61 = vpop.eup %1141 }
0x1162   :  { %v737_v62 = vadd.f32 1.0, %v1142_v61 }
0x1164   :  { %1143 = vrcp.f32 %v737_v62 }
0x116e   :  { %v1144_v63 = vpop.eup %1143 }
0x116f   :  { %v741_v3 = vmul.f32 %v1144_v63, %v646_v50 }
0x11d2   :  { %v744_v1 = vpop.permute.xlu1 %743 }
0x11d3   :  { %v746_v2 = vmul.f32 %v1144_v63, %v744_v1 }
0x11d5   :  { %748 = vrot.lane.b32.xlu0 %v746_v2, %s1159_s19 }
0x1247   :  { %v749_v6 = vpop.permute.xlu0 %748 }
0x1248   :  { %v751_v8 = vadd.f32 %v749_v6, %v741_v3 }
0x124a   :  { %1145 = vtanh.f32 %v751_v8 }
0x1254   :  { %v1146_v9 = vpop.eup %1145 }
0x1255   :  { %754 = vrot.lane.b32.xlu1 %v1146_v9, %s1158_s18 }
0x12c7   :  { %v755_v10 = vpop.permute.xlu1 %754 }
0x12c8   :  { %v757_v11 = vmul.f32 %v1144_v63, %v755_v10 }
0x12ca   :  { %759 = vrot.lane.b32.xlu0 %v757_v11, %s1159_s19 }
0x133c   :  { %v760_v12 = vpop.permute.xlu0 %759 }
0x133d   :  { %904 = vst.msk [vmem:[%s1345_s2 + $0xc] sm:$0x3] %vm15_vm0, %v760_v12  ;;  %1035 = vmatmul.mubr.msk.f32.vlgmr.msra.gmra.mrb[6].mxu1 %vm25_vm2, %v760_v12 }
0x1410   :  { %v834_v14 = vpop.f32.mrb[6].mxu1 }
0x1411   :  { %v838_v15 = vadd.f32 %v905_v13, %v834_v14  ;;  %v1036_v16 = vpop.f32.mrb[7].mxu1 }
0x1413   :  { %1147 = vtanh.f32 %v838_v15  ;;  %v907_v18 = vmul.f32 -1.442695, %v838_v15 }
0x1415   :  { %1149 = vpow2.f32 %v907_v18 }
0x141d   :  { %v1148_v17 = vpop.eup %1147 }
0x141e   :  { %848 = vrot.lane.b32.xlu1 %v1148_v17, %s1158_s18 }
0x141f   :  { %v1150_v19 = vpop.eup %1149 }
0x1420   :  { %v842_v20 = vadd.f32 1.0, %v1150_v19 }
0x1422   :  { %1151 = vrcp.f32 %v842_v20 }
0x142c   :  { %v1152_v21 = vpop.eup %1151 }
0x142d   :  { %v846_v24 = vmul.f32 %v1152_v21, %v751_v8 }
0x1490   :  { %v849_v22 = vpop.permute.xlu1 %848 }
0x1491   :  { %v851_v23 = vmul.f32 %v1152_v21, %v849_v22 }
0x1493   :  { %853 = vrot.lane.b32.xlu0 %v851_v23, %s1159_s19 }
0x1505   :  { %v854_v25 = vpop.permute.xlu0 %853 }
0x1506   :  { %v856_v26 = vadd.f32 %v854_v25, %v846_v24 }
0x1508   :  { %1153 = vtanh.f32 %v856_v26 }
0x1512   :  { %v1154_v27 = vpop.eup %1153 }
0x1513   :  { %859 = vrot.lane.b32.xlu1 %v1154_v27, %s1158_s18 }
0x1517   :  { %871 = vrot.lane.b32.xlu1 %v856_v26, %s1160_s0 }
0x1585   :  { %v860_v28 = vpop.permute.xlu1 %859 }
0x1586   :  { %v862_v29 = vmul.f32 %v1152_v21, %v860_v28 }
0x1588   :  { %864 = vrot.lane.b32.xlu0 %v862_v29, %s1159_s19 }
0x1589   :  { %v872_v30 = vpop.permute.xlu1 %871 }
0x158a   :  { %874 = vst.msk [vmem:[#allocation3] sm:$0x3] %vm15_vm0, %v872_v30 }
0x15fa   :  { %v865_v31 = vpop.permute.xlu0 %864 }
0x15fb   :  { %908 = vst.msk [vmem:[%s1345_s2 + $0xe] sm:$0x3] %vm15_vm0, %v865_v31  ;;  %869 = vst.msk [vmem:[#allocation2] sm:$0x3] %vm15_vm0, %v865_v31 }

</bundles_post_ra>
